<compile_context>
chip_gen: v5e
topology: v5e:2x2
jax: 0.10.0
libtpu: 0.0.40
codegen_flags: <defaults>
</compile_context>

<pallas_src>
import functools

import jax
import jax.numpy as jnp
from jax.experimental import pallas as pl
from jax.experimental.pallas import tpu as pltpu


# ----------------------------------------------------------------------------
# Pallas kernel
# ----------------------------------------------------------------------------
def _cff_kernel(lo_ref, hi_ref,                       # scalar-prefetch (SMEM)
                xlw_ref, xh_ref, wl_ref, wh_ref,      # VMEM inputs
                wlo_ref, whi_ref, shift_ref,
                out_ref,                              # VMEM output
                up_ref):                              # VMEM scratch
    # xlw_ref : (H_low, W+4, C_low)  W-upsampled + W-padded low feature (full img)
    # xh_ref  : (TH*W, C_high)       high-res feature rows of this tile
    # wl_ref  : (9, C_low, C_out)    3x3 taps (ky,kx row-major), BN scale folded
    # wh_ref  : (C_high, C_out)      1x1 conv, BN scale folded
    # wlo/whi : (H+4, 1)             per padded output row bilinear weights
    # shift   : (1, C_out)           combined folded BN shift
    # out_ref : (TH*W, C_out)
    # up_ref  : (TH+4, W+4, C_low)   scratch: upsampled + padded halo tile
    THp, Wp, C_low = up_ref.shape
    TH = THp - 4
    W = Wp - 4

    t = pl.program_id(1)
    g0 = t * TH                     # first padded-coordinate row of this tile

    # ---- fused bilinear H-upsample (align_corners=True) + H zero-padding ----
    # padded row g = wlo[g] * xlw[lo[g]] + whi[g] * xlw[hi[g]]  (weights are 0
    # on the 2-row zero-pad borders, so pad rows come out exactly zero).
    for r in range(THp):
        g = g0 + r
        lo = lo_ref[g]
        hi = hi_ref[g]
        wlo = wlo_ref[pl.ds(g, 1), :]           # (1, 1)
        whi = whi_ref[pl.ds(g, 1), :]           # (1, 1)
        up_ref[r] = wlo * xlw_ref[lo] + whi * xlw_ref[hi]

    # ---- 1x1 conv on x_high initializes the accumulator (BN folded in wh) ---
    acc = jnp.dot(xh_ref[...], wh_ref[...], preferred_element_type=jnp.float32)

    # ---- dilated 3x3 conv: 9 shifted MXU matmuls over the halo tile ----------
    for k in range(9):
        ky = 2 * (k // 3)
        kx = 2 * (k % 3)
        patch = up_ref[ky:ky + TH, kx:kx + W, :].reshape(TH * W, C_low)
        acc = acc + jnp.dot(patch, wl_ref[k], preferred_element_type=jnp.float32)

    # ---- combined folded-BN shift + ReLU, lane-dense store -------------------
    out_ref[...] = jnp.maximum(acc + shift_ref[...], 0.0).astype(out_ref.dtype)


# ----------------------------------------------------------------------------
# Bilinear interpolation helpers (align_corners=True)
# ----------------------------------------------------------------------------
def _interp_matrix(out_size, in_size, dtype=jnp.float32):
    if out_size == 1 or in_size == 1:
        lo = jnp.zeros((out_size,), jnp.int32)
        hi = lo
        frac = jnp.zeros((out_size,), dtype)
    else:
        pos = jnp.arange(out_size, dtype=dtype) * (in_size - 1) / (out_size - 1)
        lo = jnp.clip(jnp.floor(pos).astype(jnp.int32), 0, in_size - 1)
        hi = jnp.clip(lo + 1, 0, in_size - 1)
        frac = pos - lo.astype(dtype)
    return (jax.nn.one_hot(lo, in_size, dtype=dtype) * (1.0 - frac)[:, None]
            + jax.nn.one_hot(hi, in_size, dtype=dtype) * frac[:, None])


def _row_interp_tables(H_out, H_in, pad):
    """Per padded output row: 2-tap source indices + weights (0 on pad rows)."""
    Hp = H_out + 2 * pad
    i = jnp.arange(Hp) - pad
    valid = (i >= 0) & (i < H_out)
    if H_out == 1 or H_in == 1:
        pos = jnp.zeros((Hp,), jnp.float32)
    else:
        pos = (jnp.clip(i, 0, H_out - 1).astype(jnp.float32)
               * (H_in - 1) / (H_out - 1))
    lo = jnp.clip(jnp.floor(pos).astype(jnp.int32), 0, H_in - 1)
    hi = jnp.clip(lo + 1, 0, H_in - 1)
    frac = pos - lo.astype(jnp.float32)
    w_lo = jnp.where(valid, 1.0 - frac, 0.0).astype(jnp.float32).reshape(Hp, 1)
    w_hi = jnp.where(valid, frac, 0.0).astype(jnp.float32).reshape(Hp, 1)
    lo = jnp.where(valid, lo, 0).astype(jnp.int32)
    hi = jnp.where(valid, hi, 0).astype(jnp.int32)
    return lo, hi, w_lo, w_hi


def _bilinear_upsample_align_corners(x_nhwc, out_hw):
    H_out, W_out = out_hw
    _, H_in, W_in, _ = x_nhwc.shape
    A_h = _interp_matrix(H_out, H_in, x_nhwc.dtype)
    A_w = _interp_matrix(W_out, W_in, x_nhwc.dtype)
    x = jnp.einsum('ph,nhwc->npwc', A_h, x_nhwc)
    x = jnp.einsum('qw,npwc->npqc', A_w, x)
    return x


def _pick_row_tile(H, W, want):
    """Largest divisor of H <= want whose flattened tile (TH*W) is 8-aligned."""
    want = max(1, min(want, H))
    for th in range(want, 0, -1):
        if H % th == 0 and (th * W) % 8 == 0:
            return th
    return H          # full-extent block is always a legal BlockSpec


# ----------------------------------------------------------------------------
# Wrapper around pallas_call
# ----------------------------------------------------------------------------
@functools.partial(jax.jit, static_argnames=("eps", "row_tile"))
def cff_pallas(x_low_nhwc, x_high_nhwc, w_low_oihw, w_high_oihw,
               bn_low, bn_high, *, eps=1e-5, row_tile=32):
    N, H, W, C_high = x_high_nhwc.shape
    _, H_low, W_low, C_low = x_low_nhwc.shape
    C_out = w_low_oihw.shape[0]

    # ---- fold inference BatchNorm into conv weights + single shift ----------
    gl, bl, ml, vl = bn_low
    gh, bh, mh, vh = bn_high
    scale_l = gl / jnp.sqrt(vl + eps)
    scale_h = gh / jnp.sqrt(vh + eps)
    shift = (bl - ml * scale_l) + (bh - mh * scale_h)

    w_low_taps = (jnp.transpose(w_low_oihw, (2, 3, 1, 0)).reshape(9, C_low, C_out)
                  * scale_l[None, None, :])
    w_high_mat = w_high_oihw[:, :, 0, 0].T * scale_h[None, :]

    # ---- pad C_out to a multiple of 128 for lane-dense (unmasked) stores ----
    C_out_pad = ((C_out + 127) // 128) * 128
    cpad = C_out_pad - C_out
    if cpad:
        w_low_taps = jnp.pad(w_low_taps, ((0, 0), (0, 0), (0, cpad)))
        w_high_mat = jnp.pad(w_high_mat, ((0, 0), (0, cpad)))
        shift = jnp.pad(shift, (0, cpad))
    shift = shift.reshape(1, C_out_pad)

    # ---- W-direction bilinear upsample + W zero-pad on the low-res-H grid ---
    A_w = _interp_matrix(W, W_low)
    x_lw = jnp.einsum('pw,nhwc->nhpc', A_w, x_low_nhwc)        # (N, H_low, W, C_low)
    x_lw = jnp.pad(x_lw, ((0, 0), (0, 0), (2, 2), (0, 0)))     # (N, H_low, W+4, C_low)
    Wp = W + 4

    # ---- per-row H-interp tables (indices -> SMEM prefetch, weights -> VMEM) -
    lo_tab, hi_tab, wlo_tab, whi_tab = _row_interp_tables(H, H_low, pad=2)
    Hp = H + 4

    # ---- spatial row tiling ---------------------------------------------------
    TH = _pick_row_tile(H, W, row_tile)
    T = H // TH
    THp = TH + 4

    x_high_flat = x_high_nhwc.reshape(N, H * W, C_high)

    # ---- explicit scoped-VMEM budget (double-buffered blocks + scratch) ------
    blk_elems = (H_low * Wp * C_low + TH * W * C_high + 9 * C_low * C_out_pad
                 + C_high * C_out_pad + 2 * Hp + C_out_pad + TH * W * C_out_pad)
    scratch_elems = THp * Wp * C_low
    vmem_limit = int(min(max(4 * 4 * (2 * blk_elems + scratch_elems),
                             8 * 1024 * 1024),
                         48 * 1024 * 1024))

    out_flat = pl.pallas_call(
        _cff_kernel,
        out_shape=jax.ShapeDtypeStruct((N, H * W, C_out_pad), jnp.float32),
        grid_spec=pltpu.PrefetchScalarGridSpec(
            num_scalar_prefetch=2,
            grid=(N, T),
            in_specs=[
                pl.BlockSpec((None, H_low, Wp, C_low),
                             lambda n, t, lo, hi: (n, 0, 0, 0)),
                pl.BlockSpec((None, TH * W, C_high),
                             lambda n, t, lo, hi: (n, t, 0)),
                pl.BlockSpec((9, C_low, C_out_pad),
                             lambda n, t, lo, hi: (0, 0, 0)),
                pl.BlockSpec((C_high, C_out_pad),
                             lambda n, t, lo, hi: (0, 0)),
                pl.BlockSpec((Hp, 1),
                             lambda n, t, lo, hi: (0, 0)),
                pl.BlockSpec((Hp, 1),
                             lambda n, t, lo, hi: (0, 0)),
                pl.BlockSpec((1, C_out_pad),
                             lambda n, t, lo, hi: (0, 0)),
            ],
            out_specs=pl.BlockSpec((None, TH * W, C_out_pad),
                                   lambda n, t, lo, hi: (n, t, 0)),
            scratch_shapes=[pltpu.VMEM((THp, Wp, C_low), jnp.float32)],
        ),
        compiler_params=pltpu.CompilerParams(
            dimension_semantics=("parallel", "parallel"),
            vmem_limit_bytes=vmem_limit),
    )(lo_tab, hi_tab, x_lw, x_high_flat, w_low_taps, w_high_mat,
      wlo_tab, whi_tab, shift)

    return out_flat[:, :, :C_out].reshape(N, H, W, C_out)


# ----------------------------------------------------------------------------
# Pure-JAX reference (lax.conv path) for validation
# ----------------------------------------------------------------------------
def cff_reference(x_low_nhwc, x_high_nhwc, w_low_oihw, w_high_oihw,
                  scale_l, shift_l, scale_h, shift_h):
    H, W = x_high_nhwc.shape[1:3]
    xu = _bilinear_upsample_align_corners(x_low_nhwc, (H, W))
    y_low = jax.lax.conv_general_dilated(
        xu, jnp.transpose(w_low_oihw, (2, 3, 1, 0)),
        window_strides=(1, 1), padding=((2, 2), (2, 2)), rhs_dilation=(2, 2),
        dimension_numbers=('NHWC', 'HWIO', 'NHWC'))
    y_low = y_low * scale_l + shift_l
    y_high = jax.lax.conv_general_dilated(
        x_high_nhwc, jnp.transpose(w_high_oihw, (2, 3, 1, 0)),
        window_strides=(1, 1), padding='VALID',
        dimension_numbers=('NHWC', 'HWIO', 'NHWC'))
    y_high = y_high * scale_h + shift_h
    return jax.nn.relu(y_low + y_high)


# ----------------------------------------------------------------------------
if __name__ == "__main__":
    N = 2
    C_low, C_high, C_out = 8, 4, 8
    H_low, W_low = 8, 8          # low-res input
    H_high, W_high = 16, 16      # high-res input (target spatial size)
    eps = 1e-5

    key = jax.random.PRNGKey(0)
    ks = jax.random.split(key, 12)

    # activations (PyTorch NCHW, permuted to NHWC for the kernel)
    x_low_nchw = jax.random.normal(ks[0], (N, C_low, H_low, W_low), jnp.float32)
    x_high_nchw = jax.random.normal(ks[1], (N, C_high, H_high, W_high), jnp.float32)
    x_low = jnp.transpose(x_low_nchw, (0, 2, 3, 1))
    x_high = jnp.transpose(x_high_nchw, (0, 2, 3, 1))

    # conv weights (PyTorch OIHW, bias=False)
    w_low = 0.1 * jax.random.normal(ks[2], (C_out, C_low, 3, 3), jnp.float32)
    w_high = 0.1 * jax.random.normal(ks[3], (C_out, C_high, 1, 1), jnp.float32)

    # BatchNorm parameters / running stats (inference mode)
    def make_bn(kg, kb, km, kv):
        gamma = 1.0 + 0.1 * jax.random.normal(kg, (C_out,), jnp.float32)
        beta = 0.1 * jax.random.normal(kb, (C_out,), jnp.float32)
        mean = 0.1 * jax.random.normal(km, (C_out,), jnp.float32)
        var = 0.5 + 0.1 * jnp.abs(jax.random.normal(kv, (C_out,), jnp.float32))
        return gamma, beta, mean, var

    bn_low = make_bn(ks[4], ks[5], ks[6], ks[7])
    bn_high = make_bn(ks[8], ks[9], ks[10], ks[11])

    out = cff_pallas(x_low, x_high, w_low, w_high, bn_low, bn_high,
                     eps=eps, row_tile=8)
    out = jax.block_until_ready(out)

    # reference with folded BN
    scale_l = bn_low[0] / jnp.sqrt(bn_low[3] + eps)
    shift_l = bn_low[1] - bn_low[2] * scale_l
    scale_h = bn_high[0] / jnp.sqrt(bn_high[3] + eps)
    shift_h = bn_high[1] - bn_high[2] * scale_h
    ref = cff_reference(x_low, x_high, w_low, w_high,
                        scale_l, shift_l, scale_h, shift_h)
    ref = jax.block_until_ready(ref)

    assert out.shape == (N, H_high, W_high, C_out)
    if not jnp.allclose(out, ref, atol=1e-4, rtol=1e-4):
        max_err = float(jnp.max(jnp.abs(out - ref)))
        raise AssertionError(
            f"Pallas CFF kernel mismatch vs reference (max abs err {max_err})")

    print("KERNEL_OK")
</pallas_src>

<mosaic_0001>
module attributes {stable_mosaic.version = 11 : i64} {
  func.func @_cff_kernel(%arg0: i32, %arg1: i32, %arg2: memref<20xi32, #tpu.memory_space<smem>>, %arg3: memref<20xi32, #tpu.memory_space<smem>>, %arg4: memref<1x8x20x8xf32, #tpu.memory_space<vmem>>, %arg5: memref<1x128x4xf32, #tpu.memory_space<vmem>>, %arg6: memref<9x8x128xf32, #tpu.memory_space<vmem>>, %arg7: memref<4x128xf32, #tpu.memory_space<vmem>>, %arg8: memref<20x1xf32, #tpu.memory_space<vmem>>, %arg9: memref<20x1xf32, #tpu.memory_space<vmem>>, %arg10: memref<1x128xf32, #tpu.memory_space<vmem>>, %arg11: memref<1x128x128xf32, #tpu.memory_space<vmem>>, %arg12: memref<12x20x8xf32, #tpu.memory_space<vmem>>) attributes {dimension_semantics = [#tpu.dimension_semantics<parallel>, #tpu.dimension_semantics<parallel>], iteration_bounds = array<i64: 2, 2>, scalar_prefetch = 2 : i64, scratch_operands = 1 : i64, tpu.core_type = #tpu.core_type<tc>, window_params = [{transform_indices = @transform_0, window_bounds = array<i64: 1, 8, 20, 8>}, {transform_indices = @transform_1, window_bounds = array<i64: 1, 128, 4>}, {pipeline_mode = #tpu.pipeline_mode<synchronous>, transform_indices = @transform_2, window_bounds = array<i64: 9, 8, 128>}, {pipeline_mode = #tpu.pipeline_mode<synchronous>, transform_indices = @transform_3, window_bounds = array<i64: 4, 128>}, {pipeline_mode = #tpu.pipeline_mode<synchronous>, transform_indices = @transform_4, window_bounds = array<i64: 20, 1>}, {pipeline_mode = #tpu.pipeline_mode<synchronous>, transform_indices = @transform_5, window_bounds = array<i64: 20, 1>}, {pipeline_mode = #tpu.pipeline_mode<synchronous>, transform_indices = @transform_6, window_bounds = array<i64: 1, 128>}, {transform_indices = @transform_7, window_bounds = array<i64: 1, 128, 128>}]} {
    %c8_i32 = arith.constant 8 : i32
    %0 = arith.muli %arg1, %c8_i32 : i32
    %c0_i32 = arith.constant 0 : i32
    %1 = arith.addi %0, %c0_i32 : i32
    %2 = arith.index_cast %1 : i32 to index
    %3 = memref.load %arg2[%2] : memref<20xi32, #tpu.memory_space<smem>>
    %4 = arith.index_cast %1 : i32 to index
    %5 = memref.load %arg3[%4] : memref<20xi32, #tpu.memory_space<smem>>
    %6 = arith.index_cast %1 : i32 to index
    %c0 = arith.constant 0 : index
    %7 = vector.load %arg8[%6, %c0] : memref<20x1xf32, #tpu.memory_space<vmem>>, vector<1x1xf32>
    %8 = arith.index_cast %1 : i32 to index
    %c0_0 = arith.constant 0 : index
    %9 = vector.load %arg9[%8, %c0_0] : memref<20x1xf32, #tpu.memory_space<vmem>>, vector<1x1xf32>
    %c0_1 = arith.constant 0 : index
    %10 = arith.index_cast %3 : i32 to index
    %c0_2 = arith.constant 0 : index
    %c0_3 = arith.constant 0 : index
    %11 = vector.load %arg4[%c0_1, %10, %c0_2, %c0_3] : memref<1x8x20x8xf32, #tpu.memory_space<vmem>>, vector<1x1x20x8xf32>
    %12 = vector.shape_cast %11 : vector<1x1x20x8xf32> to vector<20x8xf32>
    %13 = vector.broadcast %7 : vector<1x1xf32> to vector<20x8xf32>
    %14 = arith.mulf %13, %12 : vector<20x8xf32>
    %c0_4 = arith.constant 0 : index
    %15 = arith.index_cast %5 : i32 to index
    %c0_5 = arith.constant 0 : index
    %c0_6 = arith.constant 0 : index
    %16 = vector.load %arg4[%c0_4, %15, %c0_5, %c0_6] : memref<1x8x20x8xf32, #tpu.memory_space<vmem>>, vector<1x1x20x8xf32>
    %17 = vector.shape_cast %16 : vector<1x1x20x8xf32> to vector<20x8xf32>
    %18 = vector.broadcast %9 : vector<1x1xf32> to vector<20x8xf32>
    %19 = arith.mulf %18, %17 : vector<20x8xf32>
    %20 = arith.addf %14, %19 : vector<20x8xf32>
    %c0_7 = arith.constant 0 : index
    %c0_8 = arith.constant 0 : index
    %c0_9 = arith.constant 0 : index
    %21 = vector.load %arg12[%c0_7, %c0_8, %c0_9] : memref<12x20x8xf32, #tpu.memory_space<vmem>>, vector<1x20x8xf32>
    %22 = vector.shape_cast %21 : vector<1x20x8xf32> to vector<20x8xf32>
    %23 = vector.shape_cast %20 : vector<20x8xf32> to vector<1x20x8xf32>
    tpu.vector_store %arg12[%c0_7, %c0_8, %c0_9], %23 {strides = array<i32>} : memref<12x20x8xf32, #tpu.memory_space<vmem>>, vector<1x20x8xf32>,
    %c1_i32 = arith.constant 1 : i32
    %24 = arith.addi %0, %c1_i32 : i32
    %25 = arith.index_cast %24 : i32 to index
    %26 = memref.load %arg2[%25] : memref<20xi32, #tpu.memory_space<smem>>
    %27 = arith.index_cast %24 : i32 to index
    %28 = memref.load %arg3[%27] : memref<20xi32, #tpu.memory_space<smem>>
    %29 = arith.index_cast %24 : i32 to index
    %c0_10 = arith.constant 0 : index
    %30 = vector.load %arg8[%29, %c0_10] : memref<20x1xf32, #tpu.memory_space<vmem>>, vector<1x1xf32>
    %31 = arith.index_cast %24 : i32 to index
    %c0_11 = arith.constant 0 : index
    %32 = vector.load %arg9[%31, %c0_11] : memref<20x1xf32, #tpu.memory_space<vmem>>, vector<1x1xf32>
    %c0_12 = arith.constant 0 : index
    %33 = arith.index_cast %26 : i32 to index
    %c0_13 = arith.constant 0 : index
    %c0_14 = arith.constant 0 : index
    %34 = vector.load %arg4[%c0_12, %33, %c0_13, %c0_14] : memref<1x8x20x8xf32, #tpu.memory_space<vmem>>, vector<1x1x20x8xf32>
    %35 = vector.shape_cast %34 : vector<1x1x20x8xf32> to vector<20x8xf32>
    %36 = vector.broadcast %30 : vector<1x1xf32> to vector<20x8xf32>
    %37 = arith.mulf %36, %35 : vector<20x8xf32>
    %c0_15 = arith.constant 0 : index
    %38 = arith.index_cast %28 : i32 to index
    %c0_16 = arith.constant 0 : index
    %c0_17 = arith.constant 0 : index
    %39 = vector.load %arg4[%c0_15, %38, %c0_16, %c0_17] : memref<1x8x20x8xf32, #tpu.memory_space<vmem>>, vector<1x1x20x8xf32>
    %40 = vector.shape_cast %39 : vector<1x1x20x8xf32> to vector<20x8xf32>
    %41 = vector.broadcast %32 : vector<1x1xf32> to vector<20x8xf32>
    %42 = arith.mulf %41, %40 : vector<20x8xf32>
    %43 = arith.addf %37, %42 : vector<20x8xf32>
    %c1 = arith.constant 1 : index
    %c0_18 = arith.constant 0 : index
    %c0_19 = arith.constant 0 : index
    %44 = vector.load %arg12[%c1, %c0_18, %c0_19] : memref<12x20x8xf32, #tpu.memory_space<vmem>>, vector<1x20x8xf32>
    %45 = vector.shape_cast %44 : vector<1x20x8xf32> to vector<20x8xf32>
    %46 = vector.shape_cast %43 : vector<20x8xf32> to vector<1x20x8xf32>
    tpu.vector_store %arg12[%c1, %c0_18, %c0_19], %46 {strides = array<i32>} : memref<12x20x8xf32, #tpu.memory_space<vmem>>, vector<1x20x8xf32>,
    %c2_i32 = arith.constant 2 : i32
    %47 = arith.addi %0, %c2_i32 : i32
    %48 = arith.index_cast %47 : i32 to index
    %49 = memref.load %arg2[%48] : memref<20xi32, #tpu.memory_space<smem>>
    %50 = arith.index_cast %47 : i32 to index
    %51 = memref.load %arg3[%50] : memref<20xi32, #tpu.memory_space<smem>>
    %52 = arith.index_cast %47 : i32 to index
    %c0_20 = arith.constant 0 : index
    %53 = vector.load %arg8[%52, %c0_20] : memref<20x1xf32, #tpu.memory_space<vmem>>, vector<1x1xf32>
    %54 = arith.index_cast %47 : i32 to index
    %c0_21 = arith.constant 0 : index
    %55 = vector.load %arg9[%54, %c0_21] : memref<20x1xf32, #tpu.memory_space<vmem>>, vector<1x1xf32>
    %c0_22 = arith.constant 0 : index
    %56 = arith.index_cast %49 : i32 to index
    %c0_23 = arith.constant 0 : index
    %c0_24 = arith.constant 0 : index
    %57 = vector.load %arg4[%c0_22, %56, %c0_23, %c0_24] : memref<1x8x20x8xf32, #tpu.memory_space<vmem>>, vector<1x1x20x8xf32>
    %58 = vector.shape_cast %57 : vector<1x1x20x8xf32> to vector<20x8xf32>
    %59 = vector.broadcast %53 : vector<1x1xf32> to vector<20x8xf32>
    %60 = arith.mulf %59, %58 : vector<20x8xf32>
    %c0_25 = arith.constant 0 : index
    %61 = arith.index_cast %51 : i32 to index
    %c0_26 = arith.constant 0 : index
    %c0_27 = arith.constant 0 : index
    %62 = vector.load %arg4[%c0_25, %61, %c0_26, %c0_27] : memref<1x8x20x8xf32, #tpu.memory_space<vmem>>, vector<1x1x20x8xf32>
    %63 = vector.shape_cast %62 : vector<1x1x20x8xf32> to vector<20x8xf32>
    %64 = vector.broadcast %55 : vector<1x1xf32> to vector<20x8xf32>
    %65 = arith.mulf %64, %63 : vector<20x8xf32>
    %66 = arith.addf %60, %65 : vector<20x8xf32>
    %c2 = arith.constant 2 : index
    %c0_28 = arith.constant 0 : index
    %c0_29 = arith.constant 0 : index
    %67 = vector.load %arg12[%c2, %c0_28, %c0_29] : memref<12x20x8xf32, #tpu.memory_space<vmem>>, vector<1x20x8xf32>
    %68 = vector.shape_cast %67 : vector<1x20x8xf32> to vector<20x8xf32>
    %69 = vector.shape_cast %66 : vector<20x8xf32> to vector<1x20x8xf32>
    tpu.vector_store %arg12[%c2, %c0_28, %c0_29], %69 {strides = array<i32>} : memref<12x20x8xf32, #tpu.memory_space<vmem>>, vector<1x20x8xf32>,
    %c3_i32 = arith.constant 3 : i32
    %70 = arith.addi %0, %c3_i32 : i32
    %71 = arith.index_cast %70 : i32 to index
    %72 = memref.load %arg2[%71] : memref<20xi32, #tpu.memory_space<smem>>
    %73 = arith.index_cast %70 : i32 to index
    %74 = memref.load %arg3[%73] : memref<20xi32, #tpu.memory_space<smem>>
    %75 = arith.index_cast %70 : i32 to index
    %c0_30 = arith.constant 0 : index
    %76 = vector.load %arg8[%75, %c0_30] : memref<20x1xf32, #tpu.memory_space<vmem>>, vector<1x1xf32>
    %77 = arith.index_cast %70 : i32 to index
    %c0_31 = arith.constant 0 : index
    %78 = vector.load %arg9[%77, %c0_31] : memref<20x1xf32, #tpu.memory_space<vmem>>, vector<1x1xf32>
    %c0_32 = arith.constant 0 : index
    %79 = arith.index_cast %72 : i32 to index
    %c0_33 = arith.constant 0 : index
    %c0_34 = arith.constant 0 : index
    %80 = vector.load %arg4[%c0_32, %79, %c0_33, %c0_34] : memref<1x8x20x8xf32, #tpu.memory_space<vmem>>, vector<1x1x20x8xf32>
    %81 = vector.shape_cast %80 : vector<1x1x20x8xf32> to vector<20x8xf32>
    %82 = vector.broadcast %76 : vector<1x1xf32> to vector<20x8xf32>
    %83 = arith.mulf %82, %81 : vector<20x8xf32>
    %c0_35 = arith.constant 0 : index
    %84 = arith.index_cast %74 : i32 to index
    %c0_36 = arith.constant 0 : index
    %c0_37 = arith.constant 0 : index
    %85 = vector.load %arg4[%c0_35, %84, %c0_36, %c0_37] : memref<1x8x20x8xf32, #tpu.memory_space<vmem>>, vector<1x1x20x8xf32>
    %86 = vector.shape_cast %85 : vector<1x1x20x8xf32> to vector<20x8xf32>
    %87 = vector.broadcast %78 : vector<1x1xf32> to vector<20x8xf32>
    %88 = arith.mulf %87, %86 : vector<20x8xf32>
    %89 = arith.addf %83, %88 : vector<20x8xf32>
    %c3 = arith.constant 3 : index
    %c0_38 = arith.constant 0 : index
    %c0_39 = arith.constant 0 : index
    %90 = vector.load %arg12[%c3, %c0_38, %c0_39] : memref<12x20x8xf32, #tpu.memory_space<vmem>>, vector<1x20x8xf32>
    %91 = vector.shape_cast %90 : vector<1x20x8xf32> to vector<20x8xf32>
    %92 = vector.shape_cast %89 : vector<20x8xf32> to vector<1x20x8xf32>
    tpu.vector_store %arg12[%c3, %c0_38, %c0_39], %92 {strides = array<i32>} : memref<12x20x8xf32, #tpu.memory_space<vmem>>, vector<1x20x8xf32>,
    %c4_i32 = arith.constant 4 : i32
    %93 = arith.addi %0, %c4_i32 : i32
    %94 = arith.index_cast %93 : i32 to index
    %95 = memref.load %arg2[%94] : memref<20xi32, #tpu.memory_space<smem>>
    %96 = arith.index_cast %93 : i32 to index
    %97 = memref.load %arg3[%96] : memref<20xi32, #tpu.memory_space<smem>>
    %98 = arith.index_cast %93 : i32 to index
    %c0_40 = arith.constant 0 : index
    %99 = vector.load %arg8[%98, %c0_40] : memref<20x1xf32, #tpu.memory_space<vmem>>, vector<1x1xf32>
    %100 = arith.index_cast %93 : i32 to index
    %c0_41 = arith.constant 0 : index
    %101 = vector.load %arg9[%100, %c0_41] : memref<20x1xf32, #tpu.memory_space<vmem>>, vector<1x1xf32>
    %c0_42 = arith.constant 0 : index
    %102 = arith.index_cast %95 : i32 to index
    %c0_43 = arith.constant 0 : index
    %c0_44 = arith.constant 0 : index
    %103 = vector.load %arg4[%c0_42, %102, %c0_43, %c0_44] : memref<1x8x20x8xf32, #tpu.memory_space<vmem>>, vector<1x1x20x8xf32>
    %104 = vector.shape_cast %103 : vector<1x1x20x8xf32> to vector<20x8xf32>
    %105 = vector.broadcast %99 : vector<1x1xf32> to vector<20x8xf32>
    %106 = arith.mulf %105, %104 : vector<20x8xf32>
    %c0_45 = arith.constant 0 : index
    %107 = arith.index_cast %97 : i32 to index
    %c0_46 = arith.constant 0 : index
    %c0_47 = arith.constant 0 : index
    %108 = vector.load %arg4[%c0_45, %107, %c0_46, %c0_47] : memref<1x8x20x8xf32, #tpu.memory_space<vmem>>, vector<1x1x20x8xf32>
    %109 = vector.shape_cast %108 : vector<1x1x20x8xf32> to vector<20x8xf32>
    %110 = vector.broadcast %101 : vector<1x1xf32> to vector<20x8xf32>
    %111 = arith.mulf %110, %109 : vector<20x8xf32>
    %112 = arith.addf %106, %111 : vector<20x8xf32>
    %c4 = arith.constant 4 : index
    %c0_48 = arith.constant 0 : index
    %c0_49 = arith.constant 0 : index
    %113 = vector.load %arg12[%c4, %c0_48, %c0_49] : memref<12x20x8xf32, #tpu.memory_space<vmem>>, vector<1x20x8xf32>
    %114 = vector.shape_cast %113 : vector<1x20x8xf32> to vector<20x8xf32>
    %115 = vector.shape_cast %112 : vector<20x8xf32> to vector<1x20x8xf32>
    tpu.vector_store %arg12[%c4, %c0_48, %c0_49], %115 {strides = array<i32>} : memref<12x20x8xf32, #tpu.memory_space<vmem>>, vector<1x20x8xf32>,
    %c5_i32 = arith.constant 5 : i32
    %116 = arith.addi %0, %c5_i32 : i32
    %117 = arith.index_cast %116 : i32 to index
    %118 = memref.load %arg2[%117] : memref<20xi32, #tpu.memory_space<smem>>
    %119 = arith.index_cast %116 : i32 to index
    %120 = memref.load %arg3[%119] : memref<20xi32, #tpu.memory_space<smem>>
    %121 = arith.index_cast %116 : i32 to index
    %c0_50 = arith.constant 0 : index
    %122 = vector.load %arg8[%121, %c0_50] : memref<20x1xf32, #tpu.memory_space<vmem>>, vector<1x1xf32>
    %123 = arith.index_cast %116 : i32 to index
    %c0_51 = arith.constant 0 : index
    %124 = vector.load %arg9[%123, %c0_51] : memref<20x1xf32, #tpu.memory_space<vmem>>, vector<1x1xf32>
    %c0_52 = arith.constant 0 : index
    %125 = arith.index_cast %118 : i32 to index
    %c0_53 = arith.constant 0 : index
    %c0_54 = arith.constant 0 : index
    %126 = vector.load %arg4[%c0_52, %125, %c0_53, %c0_54] : memref<1x8x20x8xf32, #tpu.memory_space<vmem>>, vector<1x1x20x8xf32>
    %127 = vector.shape_cast %126 : vector<1x1x20x8xf32> to vector<20x8xf32>
    %128 = vector.broadcast %122 : vector<1x1xf32> to vector<20x8xf32>
    %129 = arith.mulf %128, %127 : vector<20x8xf32>
    %c0_55 = arith.constant 0 : index
    %130 = arith.index_cast %120 : i32 to index
    %c0_56 = arith.constant 0 : index
    %c0_57 = arith.constant 0 : index
    %131 = vector.load %arg4[%c0_55, %130, %c0_56, %c0_57] : memref<1x8x20x8xf32, #tpu.memory_space<vmem>>, vector<1x1x20x8xf32>
    %132 = vector.shape_cast %131 : vector<1x1x20x8xf32> to vector<20x8xf32>
    %133 = vector.broadcast %124 : vector<1x1xf32> to vector<20x8xf32>
    %134 = arith.mulf %133, %132 : vector<20x8xf32>
    %135 = arith.addf %129, %134 : vector<20x8xf32>
    %c5 = arith.constant 5 : index
    %c0_58 = arith.constant 0 : index
    %c0_59 = arith.constant 0 : index
    %136 = vector.load %arg12[%c5, %c0_58, %c0_59] : memref<12x20x8xf32, #tpu.memory_space<vmem>>, vector<1x20x8xf32>
    %137 = vector.shape_cast %136 : vector<1x20x8xf32> to vector<20x8xf32>
    %138 = vector.shape_cast %135 : vector<20x8xf32> to vector<1x20x8xf32>
    tpu.vector_store %arg12[%c5, %c0_58, %c0_59], %138 {strides = array<i32>} : memref<12x20x8xf32, #tpu.memory_space<vmem>>, vector<1x20x8xf32>,
    %c6_i32 = arith.constant 6 : i32
    %139 = arith.addi %0, %c6_i32 : i32
    %140 = arith.index_cast %139 : i32 to index
    %141 = memref.load %arg2[%140] : memref<20xi32, #tpu.memory_space<smem>>
    %142 = arith.index_cast %139 : i32 to index
    %143 = memref.load %arg3[%142] : memref<20xi32, #tpu.memory_space<smem>>
    %144 = arith.index_cast %139 : i32 to index
    %c0_60 = arith.constant 0 : index
    %145 = vector.load %arg8[%144, %c0_60] : memref<20x1xf32, #tpu.memory_space<vmem>>, vector<1x1xf32>
    %146 = arith.index_cast %139 : i32 to index
    %c0_61 = arith.constant 0 : index
    %147 = vector.load %arg9[%146, %c0_61] : memref<20x1xf32, #tpu.memory_space<vmem>>, vector<1x1xf32>
    %c0_62 = arith.constant 0 : index
    %148 = arith.index_cast %141 : i32 to index
    %c0_63 = arith.constant 0 : index
    %c0_64 = arith.constant 0 : index
    %149 = vector.load %arg4[%c0_62, %148, %c0_63, %c0_64] : memref<1x8x20x8xf32, #tpu.memory_space<vmem>>, vector<1x1x20x8xf32>
    %150 = vector.shape_cast %149 : vector<1x1x20x8xf32> to vector<20x8xf32>
    %151 = vector.broadcast %145 : vector<1x1xf32> to vector<20x8xf32>
    %152 = arith.mulf %151, %150 : vector<20x8xf32>
    %c0_65 = arith.constant 0 : index
    %153 = arith.index_cast %143 : i32 to index
    %c0_66 = arith.constant 0 : index
    %c0_67 = arith.constant 0 : index
    %154 = vector.load %arg4[%c0_65, %153, %c0_66, %c0_67] : memref<1x8x20x8xf32, #tpu.memory_space<vmem>>, vector<1x1x20x8xf32>
    %155 = vector.shape_cast %154 : vector<1x1x20x8xf32> to vector<20x8xf32>
    %156 = vector.broadcast %147 : vector<1x1xf32> to vector<20x8xf32>
    %157 = arith.mulf %156, %155 : vector<20x8xf32>
    %158 = arith.addf %152, %157 : vector<20x8xf32>
    %c6 = arith.constant 6 : index
    %c0_68 = arith.constant 0 : index
    %c0_69 = arith.constant 0 : index
    %159 = vector.load %arg12[%c6, %c0_68, %c0_69] : memref<12x20x8xf32, #tpu.memory_space<vmem>>, vector<1x20x8xf32>
    %160 = vector.shape_cast %159 : vector<1x20x8xf32> to vector<20x8xf32>
    %161 = vector.shape_cast %158 : vector<20x8xf32> to vector<1x20x8xf32>
    tpu.vector_store %arg12[%c6, %c0_68, %c0_69], %161 {strides = array<i32>} : memref<12x20x8xf32, #tpu.memory_space<vmem>>, vector<1x20x8xf32>,
    %c7_i32 = arith.constant 7 : i32
    %162 = arith.addi %0, %c7_i32 : i32
    %163 = arith.index_cast %162 : i32 to index
    %164 = memref.load %arg2[%163] : memref<20xi32, #tpu.memory_space<smem>>
    %165 = arith.index_cast %162 : i32 to index
    %166 = memref.load %arg3[%165] : memref<20xi32, #tpu.memory_space<smem>>
    %167 = arith.index_cast %162 : i32 to index
    %c0_70 = arith.constant 0 : index
    %168 = vector.load %arg8[%167, %c0_70] : memref<20x1xf32, #tpu.memory_space<vmem>>, vector<1x1xf32>
    %169 = arith.index_cast %162 : i32 to index
    %c0_71 = arith.constant 0 : index
    %170 = vector.load %arg9[%169, %c0_71] : memref<20x1xf32, #tpu.memory_space<vmem>>, vector<1x1xf32>
    %c0_72 = arith.constant 0 : index
    %171 = arith.index_cast %164 : i32 to index
    %c0_73 = arith.constant 0 : index
    %c0_74 = arith.constant 0 : index
    %172 = vector.load %arg4[%c0_72, %171, %c0_73, %c0_74] : memref<1x8x20x8xf32, #tpu.memory_space<vmem>>, vector<1x1x20x8xf32>
    %173 = vector.shape_cast %172 : vector<1x1x20x8xf32> to vector<20x8xf32>
    %174 = vector.broadcast %168 : vector<1x1xf32> to vector<20x8xf32>
    %175 = arith.mulf %174, %173 : vector<20x8xf32>
    %c0_75 = arith.constant 0 : index
    %176 = arith.index_cast %166 : i32 to index
    %c0_76 = arith.constant 0 : index
    %c0_77 = arith.constant 0 : index
    %177 = vector.load %arg4[%c0_75, %176, %c0_76, %c0_77] : memref<1x8x20x8xf32, #tpu.memory_space<vmem>>, vector<1x1x20x8xf32>
    %178 = vector.shape_cast %177 : vector<1x1x20x8xf32> to vector<20x8xf32>
    %179 = vector.broadcast %170 : vector<1x1xf32> to vector<20x8xf32>
    %180 = arith.mulf %179, %178 : vector<20x8xf32>
    %181 = arith.addf %175, %180 : vector<20x8xf32>
    %c7 = arith.constant 7 : index
    %c0_78 = arith.constant 0 : index
    %c0_79 = arith.constant 0 : index
    %182 = vector.load %arg12[%c7, %c0_78, %c0_79] : memref<12x20x8xf32, #tpu.memory_space<vmem>>, vector<1x20x8xf32>
    %183 = vector.shape_cast %182 : vector<1x20x8xf32> to vector<20x8xf32>
    %184 = vector.shape_cast %181 : vector<20x8xf32> to vector<1x20x8xf32>
    tpu.vector_store %arg12[%c7, %c0_78, %c0_79], %184 {strides = array<i32>} : memref<12x20x8xf32, #tpu.memory_space<vmem>>, vector<1x20x8xf32>,
    %c8_i32_80 = arith.constant 8 : i32
    %185 = arith.addi %0, %c8_i32_80 : i32
    %186 = arith.index_cast %185 : i32 to index
    %187 = memref.load %arg2[%186] : memref<20xi32, #tpu.memory_space<smem>>
    %188 = arith.index_cast %185 : i32 to index
    %189 = memref.load %arg3[%188] : memref<20xi32, #tpu.memory_space<smem>>
    %190 = arith.index_cast %185 : i32 to index
    %c0_81 = arith.constant 0 : index
    %191 = vector.load %arg8[%190, %c0_81] : memref<20x1xf32, #tpu.memory_space<vmem>>, vector<1x1xf32>
    %192 = arith.index_cast %185 : i32 to index
    %c0_82 = arith.constant 0 : index
    %193 = vector.load %arg9[%192, %c0_82] : memref<20x1xf32, #tpu.memory_space<vmem>>, vector<1x1xf32>
    %c0_83 = arith.constant 0 : index
    %194 = arith.index_cast %187 : i32 to index
    %c0_84 = arith.constant 0 : index
    %c0_85 = arith.constant 0 : index
    %195 = vector.load %arg4[%c0_83, %194, %c0_84, %c0_85] : memref<1x8x20x8xf32, #tpu.memory_space<vmem>>, vector<1x1x20x8xf32>
    %196 = vector.shape_cast %195 : vector<1x1x20x8xf32> to vector<20x8xf32>
    %197 = vector.broadcast %191 : vector<1x1xf32> to vector<20x8xf32>
    %198 = arith.mulf %197, %196 : vector<20x8xf32>
    %c0_86 = arith.constant 0 : index
    %199 = arith.index_cast %189 : i32 to index
    %c0_87 = arith.constant 0 : index
    %c0_88 = arith.constant 0 : index
    %200 = vector.load %arg4[%c0_86, %199, %c0_87, %c0_88] : memref<1x8x20x8xf32, #tpu.memory_space<vmem>>, vector<1x1x20x8xf32>
    %201 = vector.shape_cast %200 : vector<1x1x20x8xf32> to vector<20x8xf32>
    %202 = vector.broadcast %193 : vector<1x1xf32> to vector<20x8xf32>
    %203 = arith.mulf %202, %201 : vector<20x8xf32>
    %204 = arith.addf %198, %203 : vector<20x8xf32>
    %c8 = arith.constant 8 : index
    %c0_89 = arith.constant 0 : index
    %c0_90 = arith.constant 0 : index
    %205 = vector.load %arg12[%c8, %c0_89, %c0_90] : memref<12x20x8xf32, #tpu.memory_space<vmem>>, vector<1x20x8xf32>
    %206 = vector.shape_cast %205 : vector<1x20x8xf32> to vector<20x8xf32>
    %207 = vector.shape_cast %204 : vector<20x8xf32> to vector<1x20x8xf32>
    tpu.vector_store %arg12[%c8, %c0_89, %c0_90], %207 {strides = array<i32>} : memref<12x20x8xf32, #tpu.memory_space<vmem>>, vector<1x20x8xf32>,
    %c9_i32 = arith.constant 9 : i32
    %208 = arith.addi %0, %c9_i32 : i32
    %209 = arith.index_cast %208 : i32 to index
    %210 = memref.load %arg2[%209] : memref<20xi32, #tpu.memory_space<smem>>
    %211 = arith.index_cast %208 : i32 to index
    %212 = memref.load %arg3[%211] : memref<20xi32, #tpu.memory_space<smem>>
    %213 = arith.index_cast %208 : i32 to index
    %c0_91 = arith.constant 0 : index
    %214 = vector.load %arg8[%213, %c0_91] : memref<20x1xf32, #tpu.memory_space<vmem>>, vector<1x1xf32>
    %215 = arith.index_cast %208 : i32 to index
    %c0_92 = arith.constant 0 : index
    %216 = vector.load %arg9[%215, %c0_92] : memref<20x1xf32, #tpu.memory_space<vmem>>, vector<1x1xf32>
    %c0_93 = arith.constant 0 : index
    %217 = arith.index_cast %210 : i32 to index
    %c0_94 = arith.constant 0 : index
    %c0_95 = arith.constant 0 : index
    %218 = vector.load %arg4[%c0_93, %217, %c0_94, %c0_95] : memref<1x8x20x8xf32, #tpu.memory_space<vmem>>, vector<1x1x20x8xf32>
    %219 = vector.shape_cast %218 : vector<1x1x20x8xf32> to vector<20x8xf32>
    %220 = vector.broadcast %214 : vector<1x1xf32> to vector<20x8xf32>
    %221 = arith.mulf %220, %219 : vector<20x8xf32>
    %c0_96 = arith.constant 0 : index
    %222 = arith.index_cast %212 : i32 to index
    %c0_97 = arith.constant 0 : index
    %c0_98 = arith.constant 0 : index
    %223 = vector.load %arg4[%c0_96, %222, %c0_97, %c0_98] : memref<1x8x20x8xf32, #tpu.memory_space<vmem>>, vector<1x1x20x8xf32>
    %224 = vector.shape_cast %223 : vector<1x1x20x8xf32> to vector<20x8xf32>
    %225 = vector.broadcast %216 : vector<1x1xf32> to vector<20x8xf32>
    %226 = arith.mulf %225, %224 : vector<20x8xf32>
    %227 = arith.addf %221, %226 : vector<20x8xf32>
    %c9 = arith.constant 9 : index
    %c0_99 = arith.constant 0 : index
    %c0_100 = arith.constant 0 : index
    %228 = vector.load %arg12[%c9, %c0_99, %c0_100] : memref<12x20x8xf32, #tpu.memory_space<vmem>>, vector<1x20x8xf32>
    %229 = vector.shape_cast %228 : vector<1x20x8xf32> to vector<20x8xf32>
    %230 = vector.shape_cast %227 : vector<20x8xf32> to vector<1x20x8xf32>
    tpu.vector_store %arg12[%c9, %c0_99, %c0_100], %230 {strides = array<i32>} : memref<12x20x8xf32, #tpu.memory_space<vmem>>, vector<1x20x8xf32>,
    %c10_i32 = arith.constant 10 : i32
    %231 = arith.addi %0, %c10_i32 : i32
    %232 = arith.index_cast %231 : i32 to index
    %233 = memref.load %arg2[%232] : memref<20xi32, #tpu.memory_space<smem>>
    %234 = arith.index_cast %231 : i32 to index
    %235 = memref.load %arg3[%234] : memref<20xi32, #tpu.memory_space<smem>>
    %236 = arith.index_cast %231 : i32 to index
    %c0_101 = arith.constant 0 : index
    %237 = vector.load %arg8[%236, %c0_101] : memref<20x1xf32, #tpu.memory_space<vmem>>, vector<1x1xf32>
    %238 = arith.index_cast %231 : i32 to index
    %c0_102 = arith.constant 0 : index
    %239 = vector.load %arg9[%238, %c0_102] : memref<20x1xf32, #tpu.memory_space<vmem>>, vector<1x1xf32>
    %c0_103 = arith.constant 0 : index
    %240 = arith.index_cast %233 : i32 to index
    %c0_104 = arith.constant 0 : index
    %c0_105 = arith.constant 0 : index
    %241 = vector.load %arg4[%c0_103, %240, %c0_104, %c0_105] : memref<1x8x20x8xf32, #tpu.memory_space<vmem>>, vector<1x1x20x8xf32>
    %242 = vector.shape_cast %241 : vector<1x1x20x8xf32> to vector<20x8xf32>
    %243 = vector.broadcast %237 : vector<1x1xf32> to vector<20x8xf32>
    %244 = arith.mulf %243, %242 : vector<20x8xf32>
    %c0_106 = arith.constant 0 : index
    %245 = arith.index_cast %235 : i32 to index
    %c0_107 = arith.constant 0 : index
    %c0_108 = arith.constant 0 : index
    %246 = vector.load %arg4[%c0_106, %245, %c0_107, %c0_108] : memref<1x8x20x8xf32, #tpu.memory_space<vmem>>, vector<1x1x20x8xf32>
    %247 = vector.shape_cast %246 : vector<1x1x20x8xf32> to vector<20x8xf32>
    %248 = vector.broadcast %239 : vector<1x1xf32> to vector<20x8xf32>
    %249 = arith.mulf %248, %247 : vector<20x8xf32>
    %250 = arith.addf %244, %249 : vector<20x8xf32>
    %c10 = arith.constant 10 : index
    %c0_109 = arith.constant 0 : index
    %c0_110 = arith.constant 0 : index
    %251 = vector.load %arg12[%c10, %c0_109, %c0_110] : memref<12x20x8xf32, #tpu.memory_space<vmem>>, vector<1x20x8xf32>
    %252 = vector.shape_cast %251 : vector<1x20x8xf32> to vector<20x8xf32>
    %253 = vector.shape_cast %250 : vector<20x8xf32> to vector<1x20x8xf32>
    tpu.vector_store %arg12[%c10, %c0_109, %c0_110], %253 {strides = array<i32>} : memref<12x20x8xf32, #tpu.memory_space<vmem>>, vector<1x20x8xf32>,
    %c11_i32 = arith.constant 11 : i32
    %254 = arith.addi %0, %c11_i32 : i32
    %255 = arith.index_cast %254 : i32 to index
    %256 = memref.load %arg2[%255] : memref<20xi32, #tpu.memory_space<smem>>
    %257 = arith.index_cast %254 : i32 to index
    %258 = memref.load %arg3[%257] : memref<20xi32, #tpu.memory_space<smem>>
    %259 = arith.index_cast %254 : i32 to index
    %c0_111 = arith.constant 0 : index
    %260 = vector.load %arg8[%259, %c0_111] : memref<20x1xf32, #tpu.memory_space<vmem>>, vector<1x1xf32>
    %261 = arith.index_cast %254 : i32 to index
    %c0_112 = arith.constant 0 : index
    %262 = vector.load %arg9[%261, %c0_112] : memref<20x1xf32, #tpu.memory_space<vmem>>, vector<1x1xf32>
    %c0_113 = arith.constant 0 : index
    %263 = arith.index_cast %256 : i32 to index
    %c0_114 = arith.constant 0 : index
    %c0_115 = arith.constant 0 : index
    %264 = vector.load %arg4[%c0_113, %263, %c0_114, %c0_115] : memref<1x8x20x8xf32, #tpu.memory_space<vmem>>, vector<1x1x20x8xf32>
    %265 = vector.shape_cast %264 : vector<1x1x20x8xf32> to vector<20x8xf32>
    %266 = vector.broadcast %260 : vector<1x1xf32> to vector<20x8xf32>
    %267 = arith.mulf %266, %265 : vector<20x8xf32>
    %c0_116 = arith.constant 0 : index
    %268 = arith.index_cast %258 : i32 to index
    %c0_117 = arith.constant 0 : index
    %c0_118 = arith.constant 0 : index
    %269 = vector.load %arg4[%c0_116, %268, %c0_117, %c0_118] : memref<1x8x20x8xf32, #tpu.memory_space<vmem>>, vector<1x1x20x8xf32>
    %270 = vector.shape_cast %269 : vector<1x1x20x8xf32> to vector<20x8xf32>
    %271 = vector.broadcast %262 : vector<1x1xf32> to vector<20x8xf32>
    %272 = arith.mulf %271, %270 : vector<20x8xf32>
    %273 = arith.addf %267, %272 : vector<20x8xf32>
    %c11 = arith.constant 11 : index
    %c0_119 = arith.constant 0 : index
    %c0_120 = arith.constant 0 : index
    %274 = vector.load %arg12[%c11, %c0_119, %c0_120] : memref<12x20x8xf32, #tpu.memory_space<vmem>>, vector<1x20x8xf32>
    %275 = vector.shape_cast %274 : vector<1x20x8xf32> to vector<20x8xf32>
    %276 = vector.shape_cast %273 : vector<20x8xf32> to vector<1x20x8xf32>
    tpu.vector_store %arg12[%c11, %c0_119, %c0_120], %276 {strides = array<i32>} : memref<12x20x8xf32, #tpu.memory_space<vmem>>, vector<1x20x8xf32>,
    %c0_121 = arith.constant 0 : index
    %c0_122 = arith.constant 0 : index
    %c0_123 = arith.constant 0 : index
    %277 = vector.load %arg5[%c0_121, %c0_122, %c0_123] : memref<1x128x4xf32, #tpu.memory_space<vmem>>, vector<1x128x4xf32>
    %278 = vector.shape_cast %277 : vector<1x128x4xf32> to vector<128x4xf32>
    %c0_124 = arith.constant 0 : index
    %c0_125 = arith.constant 0 : index
    %279 = vector.load %arg7[%c0_124, %c0_125] : memref<4x128xf32, #tpu.memory_space<vmem>>, vector<4x128xf32>
    %cst = arith.constant dense<0.000000e+00> : vector<128x128xf32>
    %280 = tpu.matmul %278, %279, %cst {dimension_numbers = #tpu.dot_dimension_numbers<[1], [0], [0], [1], [0, 0, 1, 1], [], []>} : vector<128x4xf32>, vector<4x128xf32>, vector<128x128xf32> -> vector<128x128xf32>
    %c0_126 = arith.constant 0 : index
    %c0_127 = arith.constant 0 : index
    %c0_128 = arith.constant 0 : index
    %281 = vector.load %arg12[%c0_126, %c0_127, %c0_128] : memref<12x20x8xf32, #tpu.memory_space<vmem>>, vector<8x16x8xf32>
    %282 = vector.shape_cast %281 : vector<8x16x8xf32> to vector<128x8xf32>
    %c0_129 = arith.constant 0 : index
    %c0_130 = arith.constant 0 : index
    %c0_131 = arith.constant 0 : index
    %283 = vector.load %arg6[%c0_129, %c0_130, %c0_131] : memref<9x8x128xf32, #tpu.memory_space<vmem>>, vector<1x8x128xf32>
    %284 = vector.shape_cast %283 : vector<1x8x128xf32> to vector<8x128xf32>
    %cst_132 = arith.constant dense<0.000000e+00> : vector<128x128xf32>
    %285 = tpu.matmul %282, %284, %cst_132 {dimension_numbers = #tpu.dot_dimension_numbers<[1], [0], [0], [1], [0, 0, 1, 1], [], []>} : vector<128x8xf32>, vector<8x128xf32>, vector<128x128xf32> -> vector<128x128xf32>
    %286 = arith.addf %280, %285 : vector<128x128xf32>
    %c0_133 = arith.constant 0 : index
    %c2_134 = arith.constant 2 : index
    %c0_135 = arith.constant 0 : index
    %287 = vector.load %arg12[%c0_133, %c2_134, %c0_135] : memref<12x20x8xf32, #tpu.memory_space<vmem>>, vector<8x16x8xf32>
    %288 = vector.shape_cast %287 : vector<8x16x8xf32> to vector<128x8xf32>
    %c1_136 = arith.constant 1 : index
    %c0_137 = arith.constant 0 : index
    %c0_138 = arith.constant 0 : index
    %289 = vector.load %arg6[%c1_136, %c0_137, %c0_138] : memref<9x8x128xf32, #tpu.memory_space<vmem>>, vector<1x8x128xf32>
    %290 = vector.shape_cast %289 : vector<1x8x128xf32> to vector<8x128xf32>
    %cst_139 = arith.constant dense<0.000000e+00> : vector<128x128xf32>
    %291 = tpu.matmul %288, %290, %cst_139 {dimension_numbers = #tpu.dot_dimension_numbers<[1], [0], [0], [1], [0, 0, 1, 1], [], []>} : vector<128x8xf32>, vector<8x128xf32>, vector<128x128xf32> -> vector<128x128xf32>
    %292 = arith.addf %286, %291 : vector<128x128xf32>
    %c0_140 = arith.constant 0 : index
    %c4_141 = arith.constant 4 : index
    %c0_142 = arith.constant 0 : index
    %293 = vector.load %arg12[%c0_140, %c4_141, %c0_142] : memref<12x20x8xf32, #tpu.memory_space<vmem>>, vector<8x16x8xf32>
    %294 = vector.shape_cast %293 : vector<8x16x8xf32> to vector<128x8xf32>
    %c2_143 = arith.constant 2 : index
    %c0_144 = arith.constant 0 : index
    %c0_145 = arith.constant 0 : index
    %295 = vector.load %arg6[%c2_143, %c0_144, %c0_145] : memref<9x8x128xf32, #tpu.memory_space<vmem>>, vector<1x8x128xf32>
    %296 = vector.shape_cast %295 : vector<1x8x128xf32> to vector<8x128xf32>
    %cst_146 = arith.constant dense<0.000000e+00> : vector<128x128xf32>
    %297 = tpu.matmul %294, %296, %cst_146 {dimension_numbers = #tpu.dot_dimension_numbers<[1], [0], [0], [1], [0, 0, 1, 1], [], []>} : vector<128x8xf32>, vector<8x128xf32>, vector<128x128xf32> -> vector<128x128xf32>
    %298 = arith.addf %292, %297 : vector<128x128xf32>
    %c2_147 = arith.constant 2 : index
    %c0_148 = arith.constant 0 : index
    %c0_149 = arith.constant 0 : index
    %299 = vector.load %arg12[%c2_147, %c0_148, %c0_149] : memref<12x20x8xf32, #tpu.memory_space<vmem>>, vector<8x16x8xf32>
    %300 = vector.shape_cast %299 : vector<8x16x8xf32> to vector<128x8xf32>
    %c3_150 = arith.constant 3 : index
    %c0_151 = arith.constant 0 : index
    %c0_152 = arith.constant 0 : index
    %301 = vector.load %arg6[%c3_150, %c0_151, %c0_152] : memref<9x8x128xf32, #tpu.memory_space<vmem>>, vector<1x8x128xf32>
    %302 = vector.shape_cast %301 : vector<1x8x128xf32> to vector<8x128xf32>
    %cst_153 = arith.constant dense<0.000000e+00> : vector<128x128xf32>
    %303 = tpu.matmul %300, %302, %cst_153 {dimension_numbers = #tpu.dot_dimension_numbers<[1], [0], [0], [1], [0, 0, 1, 1], [], []>} : vector<128x8xf32>, vector<8x128xf32>, vector<128x128xf32> -> vector<128x128xf32>
    %304 = arith.addf %298, %303 : vector<128x128xf32>
    %c2_154 = arith.constant 2 : index
    %c2_155 = arith.constant 2 : index
    %c0_156 = arith.constant 0 : index
    %305 = vector.load %arg12[%c2_154, %c2_155, %c0_156] : memref<12x20x8xf32, #tpu.memory_space<vmem>>, vector<8x16x8xf32>
    %306 = vector.shape_cast %305 : vector<8x16x8xf32> to vector<128x8xf32>
    %c4_157 = arith.constant 4 : index
    %c0_158 = arith.constant 0 : index
    %c0_159 = arith.constant 0 : index
    %307 = vector.load %arg6[%c4_157, %c0_158, %c0_159] : memref<9x8x128xf32, #tpu.memory_space<vmem>>, vector<1x8x128xf32>
    %308 = vector.shape_cast %307 : vector<1x8x128xf32> to vector<8x128xf32>
    %cst_160 = arith.constant dense<0.000000e+00> : vector<128x128xf32>
    %309 = tpu.matmul %306, %308, %cst_160 {dimension_numbers = #tpu.dot_dimension_numbers<[1], [0], [0], [1], [0, 0, 1, 1], [], []>} : vector<128x8xf32>, vector<8x128xf32>, vector<128x128xf32> -> vector<128x128xf32>
    %310 = arith.addf %304, %309 : vector<128x128xf32>
    %c2_161 = arith.constant 2 : index
    %c4_162 = arith.constant 4 : index
    %c0_163 = arith.constant 0 : index
    %311 = vector.load %arg12[%c2_161, %c4_162, %c0_163] : memref<12x20x8xf32, #tpu.memory_space<vmem>>, vector<8x16x8xf32>
    %312 = vector.shape_cast %311 : vector<8x16x8xf32> to vector<128x8xf32>
    %c5_164 = arith.constant 5 : index
    %c0_165 = arith.constant 0 : index
    %c0_166 = arith.constant 0 : index
    %313 = vector.load %arg6[%c5_164, %c0_165, %c0_166] : memref<9x8x128xf32, #tpu.memory_space<vmem>>, vector<1x8x128xf32>
    %314 = vector.shape_cast %313 : vector<1x8x128xf32> to vector<8x128xf32>
    %cst_167 = arith.constant dense<0.000000e+00> : vector<128x128xf32>
    %315 = tpu.matmul %312, %314, %cst_167 {dimension_numbers = #tpu.dot_dimension_numbers<[1], [0], [0], [1], [0, 0, 1, 1], [], []>} : vector<128x8xf32>, vector<8x128xf32>, vector<128x128xf32> -> vector<128x128xf32>
    %316 = arith.addf %310, %315 : vector<128x128xf32>
    %c4_168 = arith.constant 4 : index
    %c0_169 = arith.constant 0 : index
    %c0_170 = arith.constant 0 : index
    %317 = vector.load %arg12[%c4_168, %c0_169, %c0_170] : memref<12x20x8xf32, #tpu.memory_space<vmem>>, vector<8x16x8xf32>
    %318 = vector.shape_cast %317 : vector<8x16x8xf32> to vector<128x8xf32>
    %c6_171 = arith.constant 6 : index
    %c0_172 = arith.constant 0 : index
    %c0_173 = arith.constant 0 : index
    %319 = vector.load %arg6[%c6_171, %c0_172, %c0_173] : memref<9x8x128xf32, #tpu.memory_space<vmem>>, vector<1x8x128xf32>
    %320 = vector.shape_cast %319 : vector<1x8x128xf32> to vector<8x128xf32>
    %cst_174 = arith.constant dense<0.000000e+00> : vector<128x128xf32>
    %321 = tpu.matmul %318, %320, %cst_174 {dimension_numbers = #tpu.dot_dimension_numbers<[1], [0], [0], [1], [0, 0, 1, 1], [], []>} : vector<128x8xf32>, vector<8x128xf32>, vector<128x128xf32> -> vector<128x128xf32>
    %322 = arith.addf %316, %321 : vector<128x128xf32>
    %c4_175 = arith.constant 4 : index
    %c2_176 = arith.constant 2 : index
    %c0_177 = arith.constant 0 : index
    %323 = vector.load %arg12[%c4_175, %c2_176, %c0_177] : memref<12x20x8xf32, #tpu.memory_space<vmem>>, vector<8x16x8xf32>
    %324 = vector.shape_cast %323 : vector<8x16x8xf32> to vector<128x8xf32>
    %c7_178 = arith.constant 7 : index
    %c0_179 = arith.constant 0 : index
    %c0_180 = arith.constant 0 : index
    %325 = vector.load %arg6[%c7_178, %c0_179, %c0_180] : memref<9x8x128xf32, #tpu.memory_space<vmem>>, vector<1x8x128xf32>
    %326 = vector.shape_cast %325 : vector<1x8x128xf32> to vector<8x128xf32>
    %cst_181 = arith.constant dense<0.000000e+00> : vector<128x128xf32>
    %327 = tpu.matmul %324, %326, %cst_181 {dimension_numbers = #tpu.dot_dimension_numbers<[1], [0], [0], [1], [0, 0, 1, 1], [], []>} : vector<128x8xf32>, vector<8x128xf32>, vector<128x128xf32> -> vector<128x128xf32>
    %328 = arith.addf %322, %327 : vector<128x128xf32>
    %c4_182 = arith.constant 4 : index
    %c4_183 = arith.constant 4 : index
    %c0_184 = arith.constant 0 : index
    %329 = vector.load %arg12[%c4_182, %c4_183, %c0_184] : memref<12x20x8xf32, #tpu.memory_space<vmem>>, vector<8x16x8xf32>
    %330 = vector.shape_cast %329 : vector<8x16x8xf32> to vector<128x8xf32>
    %c8_185 = arith.constant 8 : index
    %c0_186 = arith.constant 0 : index
    %c0_187 = arith.constant 0 : index
    %331 = vector.load %arg6[%c8_185, %c0_186, %c0_187] : memref<9x8x128xf32, #tpu.memory_space<vmem>>, vector<1x8x128xf32>
    %332 = vector.shape_cast %331 : vector<1x8x128xf32> to vector<8x128xf32>
    %cst_188 = arith.constant dense<0.000000e+00> : vector<128x128xf32>
    %333 = tpu.matmul %330, %332, %cst_188 {dimension_numbers = #tpu.dot_dimension_numbers<[1], [0], [0], [1], [0, 0, 1, 1], [], []>} : vector<128x8xf32>, vector<8x128xf32>, vector<128x128xf32> -> vector<128x128xf32>
    %334 = arith.addf %328, %333 : vector<128x128xf32>
    %c0_189 = arith.constant 0 : index
    %c0_190 = arith.constant 0 : index
    %335 = vector.load %arg10[%c0_189, %c0_190] : memref<1x128xf32, #tpu.memory_space<vmem>>, vector<1x128xf32>
    %336 = vector.broadcast %335 : vector<1x128xf32> to vector<128x128xf32>
    %337 = arith.addf %334, %336 : vector<128x128xf32>
    %cst_191 = arith.constant 0.000000e+00 : f32
    %338 = vector.broadcast %cst_191 : f32 to vector<128x128xf32>
    %339 = arith.maximumf %337, %338 : vector<128x128xf32>
    %c0_192 = arith.constant 0 : index
    %c0_193 = arith.constant 0 : index
    %c0_194 = arith.constant 0 : index
    %340 = vector.load %arg11[%c0_192, %c0_193, %c0_194] : memref<1x128x128xf32, #tpu.memory_space<vmem>>, vector<1x128x128xf32>
    %341 = vector.shape_cast %340 : vector<1x128x128xf32> to vector<128x128xf32>
    %342 = vector.shape_cast %339 : vector<128x128xf32> to vector<1x128x128xf32>
    tpu.vector_store %arg11[%c0_192, %c0_193, %c0_194], %342 {strides = array<i32>} : memref<1x128x128xf32, #tpu.memory_space<vmem>>, vector<1x128x128xf32>,
    return
  }
  func.func @transform_0(%arg0: i32, %arg1: i32, %arg2: memref<20xi32, #tpu.memory_space<smem>>, %arg3: memref<20xi32, #tpu.memory_space<smem>>) -> (i32, i32, i32, i32) {
    %c0_i32 = arith.constant 0 : i32
    %c0_i32_0 = arith.constant 0 : i32
    %c0_i32_1 = arith.constant 0 : i32
    %c0_i32_2 = arith.constant 0 : i32
    return %arg0, %c0_i32, %c0_i32_0, %c0_i32_1 : i32, i32, i32, i32
  }
  func.func @transform_1(%arg0: i32, %arg1: i32, %arg2: memref<20xi32, #tpu.memory_space<smem>>, %arg3: memref<20xi32, #tpu.memory_space<smem>>) -> (i32, i32, i32) {
    %c0_i32 = arith.constant 0 : i32
    %c0_i32_0 = arith.constant 0 : i32
    return %arg0, %arg1, %c0_i32 : i32, i32, i32
  }
  func.func @transform_2(%arg0: i32, %arg1: i32, %arg2: memref<20xi32, #tpu.memory_space<smem>>, %arg3: memref<20xi32, #tpu.memory_space<smem>>) -> (i32, i32, i32) {
    %c0_i32 = arith.constant 0 : i32
    %c0_i32_0 = arith.constant 0 : i32
    %c0_i32_1 = arith.constant 0 : i32
    %c0_i32_2 = arith.constant 0 : i32
    return %c0_i32, %c0_i32_0, %c0_i32_1 : i32, i32, i32
  }
  func.func @transform_3(%arg0: i32, %arg1: i32, %arg2: memref<20xi32, #tpu.memory_space<smem>>, %arg3: memref<20xi32, #tpu.memory_space<smem>>) -> (i32, i32) {
    %c0_i32 = arith.constant 0 : i32
    %c0_i32_0 = arith.constant 0 : i32
    %c0_i32_1 = arith.constant 0 : i32
    return %c0_i32, %c0_i32_0 : i32, i32
  }
  func.func @transform_4(%arg0: i32, %arg1: i32, %arg2: memref<20xi32, #tpu.memory_space<smem>>, %arg3: memref<20xi32, #tpu.memory_space<smem>>) -> (i32, i32) {
    %c0_i32 = arith.constant 0 : i32
    %c0_i32_0 = arith.constant 0 : i32
    %c0_i32_1 = arith.constant 0 : i32
    return %c0_i32, %c0_i32_0 : i32, i32
  }
  func.func @transform_5(%arg0: i32, %arg1: i32, %arg2: memref<20xi32, #tpu.memory_space<smem>>, %arg3: memref<20xi32, #tpu.memory_space<smem>>) -> (i32, i32) {
    %c0_i32 = arith.constant 0 : i32
    %c0_i32_0 = arith.constant 0 : i32
    %c0_i32_1 = arith.constant 0 : i32
    return %c0_i32, %c0_i32_0 : i32, i32
  }
  func.func @transform_6(%arg0: i32, %arg1: i32, %arg2: memref<20xi32, #tpu.memory_space<smem>>, %arg3: memref<20xi32, #tpu.memory_space<smem>>) -> (i32, i32) {
    %c0_i32 = arith.constant 0 : i32
    %c0_i32_0 = arith.constant 0 : i32
    %c0_i32_1 = arith.constant 0 : i32
    return %c0_i32, %c0_i32_0 : i32, i32
  }
  func.func @transform_7(%arg0: i32, %arg1: i32, %arg2: memref<20xi32, #tpu.memory_space<smem>>, %arg3: memref<20xi32, #tpu.memory_space<smem>>) -> (i32, i32, i32) {
    %c0_i32 = arith.constant 0 : i32
    %c0_i32_0 = arith.constant 0 : i32
    return %arg0, %arg1, %c0_i32 : i32, i32, i32
  }
}

</mosaic_0001>

<bundles_post_ra>
// kernel: cff_pallas.1
= control target key start
LH: loop header
LB: loop body
LE: loop exit
PB: predicated region body
PF: predicated region fallthrough
CT: control target
= control target key end

     0   :  { %s2911_s15 = smov [#allocation4]   ;;  %s2912_s16 = smov [#allocation5]   ;;  %s3995_s0 = inlined_call_operand.vmem [shape: s32[20], index: 0, kind: input, shape index: {}]   ;;  %s3996_s2 = inlined_call_operand.vmem [shape: f32[2,8,20,8], index: 2, kind: input, shape index: {}]   ;;  %s3997_s3 = inlined_call_operand.vmem [shape: f32[2,256,4], index: 3, kind: input, shape index: {}]   ;;  %s3998_s4 = inlined_call_operand.vmem [shape: f32[9,8,128], index: 4, kind: input, shape index: {}]   ;;  %s3999_s5 = inlined_call_operand.vmem [shape: f32[4,128], index: 5, kind: input, shape index: {}]   ;;  %s4000_s6 = inlined_call_operand.vmem [shape: f32[20,1], index: 6, kind: input, shape index: {}]   ;;  %s4001_s7 = inlined_call_operand.vmem [shape: f32[20,1], index: 7, kind: input, shape index: {}]   ;;  %s4002_s8 = inlined_call_operand.vmem [shape: f32[1,128], index: 8, kind: input, shape index: {}]   ;;  %s4003_s9 = inlined_call_operand.vmem [shape: f32[2,256,128], index: 9, kind: output, shape index: {}]   ;;  %s4004_s1 = inlined_call_operand.vmem [shape: s32[20], index: 1, kind: input, shape index: {}]  }
   0x1   :  { %4008 = sst [smem:[#allocation20_spill]] %s3996_s2  ;;  %s15_s11 = sshll.u32 %s3995_s0, 4  ;;  %s16_s11 = int_to_ptr.vmem [resolvable:$true] %s15_s11 }
   0x2   :  { %4009 = sst [smem:[#allocation21_spill]] %s3997_s3  ;;  %s20_s14 = sshll.u32 %s4004_s1, 4  ;;  %s21_s14 = int_to_ptr.vmem [resolvable:$true] %s20_s14 }
   0x3   :  { %4010 = sst [smem:[#allocation22_spill]] %s3999_s5 }
   0x4   :  { %4011 = sst [smem:[#allocation23_spill]] %s4000_s6 }
   0x5   :  { %4012 = sst [smem:[#allocation24_spill]] %s4001_s7 }
   0x6   :  { %18 = dma.vmem_to_smem %s16_s11, 16, %s2911_s15, [#allocation3] }
   0x7   :  { %23 = dma.vmem_to_smem %s21_s14, 16, %s2912_s16, [#allocation3] }
   0x8   :  { %2889 = dma.done.wait [#allocation3], 32 }
   0x9   :  { %2890 = vsyncadd [#allocation3], 4294967264 }
   0xa   :  { %26 = sfence }
   0xb   :  { %s2969_s17 = smov 0   ;;  %s2971_s18 = smov 0  }
   0xc   :  { %s2973_s19 = smov 0   ;;  %s2975_s0 = smov 0  }
   0xd   :  { %s2977_s20 = smov 0  }
   0xe LB: > { %4013 = sst [smem:[#allocation7_spill]] %s2901_s19  ;;  %s41_s1 = sadd.s32 1, %s2901_s19  ;;  %s2909_s20 = sphi %s2977_s20, %s32_s20   ;;  %s2905_s0 = sphi %s2975_s0, %s4044_s0   ;;  %s2901_s19 = sphi %s2973_s19, %s4043_s19   ;;  %s2897_s18 = sphi %s2971_s18, %s4042_s18   ;;  %s2893_s17 = sphi %s2969_s17, %s4041_s17  }
   0xf   : > { %4014 = sst [smem:[#allocation8_spill]] %s2905_s0  ;;  %s44_s21 = sadd.s32 1, %s2905_s0 }
  0x10   : > { %p42_p0 = scmp.ge.s32.totalorder %s41_s1, 2  ;;  %p2527_p1 = scmp.ge.s32.totalorder %s2909_s20, 1 }
  0x11   : > { %p283_p2 = scmp.lt.s32.totalorder %s2909_s20, 5 }
  0x12   : > { %s4046_s1 = smov (%p42_p0, %s41_s1), 0  ;;  %s4048_s21 = smov (!%p42_p0, %s44_s21), %s2905_s0 }
  0x13   : > { %4015 = sst [smem:[#allocation9_spill]] %s4046_s1  ;;  %p284_p3 = pnand %p2527_p1, %p283_p2 }
  0x14   : > { %p46_p4 = scmp.ge.s32.totalorder %s4048_s21, 2 }
  0x15   : > { %287 = sbr.rel (%p284_p3) target bundleno = 568 (0x238), region = 48 }
  0x16   : > { %s4050_s21 = smov (%p46_p4, %s4048_s21), 0 }
  0x17   : > { %4016 = sst [smem:[#allocation10_spill]] %s4050_s21 }
  0x1a   : > { %s3004_s22 = sshll.u32 %s2893_s17, 3  ;;  %s4017_s5 = sld [smem:[#allocation22_spill]]  ;;  %vm1006_vm0 = vcmask 1043456   ;;  %vm957_vm1 = vcmask 31744   ;;  %v843_v25 = vld [vmem:[%s3998_s4] sm:$0xff]  ;;  %v2613_v28 = vld [vmem:[%s3998_s4 + $0x8] sm:$0xff] }
  0x1b   : > { %p328_p5 = scmp.lt.s32.totalorder %s2897_s18, 1  ;;  %s4018_s6 = sld [smem:[#allocation23_spill]]  ;;  %907 = vmatpush.msra.mxu0 %v843_v25  ;;  %2751 = vmatpush.msra.mxu2 %v843_v25  ;;  %v2630_v29 = vld [vmem:[%s3998_s4 + $0x10] sm:$0xff]  ;;  %v2664_v30 = vld [vmem:[%s3998_s4 + $0x20] sm:$0xff]  ;;  %vm387_vm2 = vcmask 64512   ;;  %vm390_vm3 = vcmask 60416  }
  0x1c   : > { %s4019_s7 = sld [smem:[#allocation24_spill]]  ;;  %s2529_s10 = sshll.u32 %s2893_s17, 4  ;;  %v2647_v54 = vld [vmem:[%s3998_s4 + $0x18] sm:$0xff] }
  0x1d   : > { %s4052_s18 = smov (!%p328_p5, %s2897_s18), 1  ;;  %p336_p6 = scmp.lt.s32.totalorder %s2529_s10, 31  ;;  %1156 = vmatpush.msrb.mxu2 %v2613_v28  ;;  %1450 = vmatpush.msrb.mxu0 %v2647_v54 }
  0x1e   : > { %s2530_s11 = sshll.u32 %s4052_s18, 5  ;;  %s4020_s3 = sld [smem:[#allocation21_spill]] }
  0x1f   : > { %s4054_s10 = smov (!%p336_p6, %s2529_s10), 31  ;;  %s354_s17 = sld [smem:[#allocation4 + %s3004_s22]] }
  0x20   : > { %v826_v0 = vld [vmem:[%s4017_s5] sm:$0xf]  ;;  %s3041_s12 = sadd.s32 %s2530_s11, %s4054_s10  ;;  %s3067_s23 = sld [smem:[#allocation5 + %s3004_s22]] }
  0x21   : > { %s3014_s27 = scalar_lea.vmem %s4018_s6, %s3004_s22  ;;  %2596 = vmatpush.msk.msra.mxu1 %vm1006_vm0, %v826_v0  ;;  %2752 = vmatpush.msk.msra.mxu3 %vm1006_vm0, %v826_v0  ;;  %s4005_s13 = sshll.u32 %s3041_s12, 3 }
  0x22   : > { %s3020_s30 = scalar_lea.vmem %s4019_s7, %s3004_s22  ;;  %v357_v1 = vld [vmem:[%s3014_s27] sm:$0x1]  ;;  %v2537_v3 = vld [vmem:[%s3014_s27 + $0x1] sm:$0x1]  ;;  %v2541_v5 = vld [vmem:[%s3014_s27 + $0x2] sm:$0x1] }
  0x23   : > { %v359_v2 = vld [vmem:[%s3020_s30] sm:$0x1]  ;;  %2754 = vpush %v357_v1  ;;  %v2539_v4 = vld [vmem:[%s3020_s30 + $0x1] sm:$0x1]  ;;  %v2543_v6 = vld [vmem:[%s3020_s30 + $0x2] sm:$0x1]  ;;  %1303 = vmatpush.msrb.mxu3 %v2630_v29  ;;  %1597 = vmatpush.msrb.mxu1 %v2664_v30 }
  0x24   : > { %2756 = vpush %v359_v2  ;;  %v2545_v7 = vld [vmem:[%s3014_s27 + $0x3] sm:$0x1]  ;;  %v2549_v9 = vld [vmem:[%s3014_s27 + $0x4] sm:$0x1]  ;;  %v2553_v11 = vld [vmem:[%s3014_s27 + $0x5] sm:$0x1]  ;;  %s3051_s16 = scalar_lea.vmem %s4020_s3, %s4005_s13 }
  0x25   : > { %2758 = vpush %v2537_v3  ;;  %v2547_v8 = vld [vmem:[%s3020_s30 + $0x3] sm:$0x1]  ;;  %v2551_v10 = vld [vmem:[%s3020_s30 + $0x4] sm:$0x1]  ;;  %v2555_v12 = vld [vmem:[%s3020_s30 + $0x5] sm:$0x1] }
  0x26   : > { %2760 = vpush %v2539_v4  ;;  %v2557_v13 = vld [vmem:[%s3014_s27 + $0x6] sm:$0x1]  ;;  %v811_v17 = vld [vmem:[%s3051_s16 + $0x8] sm:$0xff]  ;;  %v2561_v19 = vld [vmem:[%s3014_s27 + $0x7] sm:$0x1]  ;;  %s392_s24 = sadd.s32 1, %s3004_s22 }
  0x27   : > { %2762 = vpush %v2541_v5  ;;  %v2559_v14 = vld [vmem:[%s3020_s30 + $0x6] sm:$0x1]  ;;  %v819_v18 = vld [vmem:[%s3051_s16 + $0x48] sm:$0xff]  ;;  %v2563_v20 = vld [vmem:[%s3020_s30 + $0x7] sm:$0x1]  ;;  %s2753_s25 = smul.u32 192, %s4052_s18 }
  0x28   : > { %2764 = vpush %v2543_v6  ;;  %v810_v15 = vld [vmem:[%s3051_s16] sm:$0xff]  ;;  %v812_v21 = vld [vmem:[%s3051_s16 + $0x10] sm:$0xff]  ;;  %s3073_s26 = sld [smem:[#allocation4 + %s392_s24]]  ;;  %s430_s28 = sadd.s32 2, %s3004_s22  ;;  %v813_v23 = vld [vmem:[%s3051_s16 + $0x18] sm:$0xff] }
  0x29   : > { %2766 = vpush %v2545_v7  ;;  %v818_v16 = vld [vmem:[%s3051_s16 + $0x40] sm:$0xff]  ;;  %2597 = vmatmul.msk.f32.vlgmr.msra.gmra.mxu1 %vm957_vm1, %v810_v15  ;;  %v820_v22 = vld [vmem:[%s3051_s16 + $0x50] sm:$0xff]  ;;  %s3076_s29 = sld [smem:[#allocation5 + %s392_s24]]  ;;  %s468_s10 = sadd.s32 3, %s3004_s22  ;;  %v821_v24 = vld [vmem:[%s3051_s16 + $0x58] sm:$0xff] }
  0x2a   : > { %2768 = vpush %v2547_v8  ;;  %2605 = vmatmul.msk.f32.vlgmr.msra.gmra.mxu3 %vm957_vm1, %v818_v16  ;;  %s4021_s2 = sld [smem:[#allocation20_spill]]  ;;  %s360_s13 = smul.u32 24, %s354_s17  ;;  %v814_v26 = vld [vmem:[%s3051_s16 + $0x20] sm:$0xff]  ;;  %v815_v31 = vld [vmem:[%s3051_s16 + $0x28] sm:$0xff] }
  0x2b   : > { %2770 = vpush %v2549_v9  ;;  %s3084_s18 = sld [smem:[#allocation4 + %s430_s28]]  ;;  %s372_s5 = smul.u32 24, %s3067_s23  ;;  %v822_v27 = vld [vmem:[%s3051_s16 + $0x60] sm:$0xff]  ;;  %v823_v32 = vld [vmem:[%s3051_s16 + $0x68] sm:$0xff] }
  0x2c   : > { %2772 = vpush %v2551_v10  ;;  %s3088_s3 = sld [smem:[#allocation5 + %s430_s28]]  ;;  %s544_s21 = sadd.s32 5, %s3004_s22 }
  0x2d   : > { %2774 = vpush %v2553_v11  ;;  %s3091_s24 = sld [smem:[#allocation4 + %s468_s10]] }
  0x2e   : > { %2776 = vpush %v2555_v12  ;;  %s3093_s6 = sld [smem:[#allocation5 + %s468_s10]]  ;;  %s399_s28 = smul.u32 24, %s3073_s26 }
  0x2f   : > { %2778 = vpush %v2557_v13  ;;  %s411_s10 = smul.u32 24, %s3076_s29  ;;  %s3140_s0 = sld [smem:[#allocation5 + %s544_s21]] }
  0x30   : > { %2780 = vpush %v2559_v14  ;;  %s3082_s15 = scalar_lea.vmem %s4021_s2, %s2753_s25  ;;  %s506_s25 = sadd.s32 4, %s3004_s22 }
  0x31   : > { %2598 = vmatmul.msk.f32.gmra.mxu1 %vm957_vm1, %v811_v17  ;;  %2782 = vpush %v2561_v19  ;;  %s3099_s17 = scalar_lea.vmem %s3082_s15, %s360_s13  ;;  %s3106_s14 = sld [smem:[#allocation4 + %s506_s25]] }
  0x32   : > { %2606 = vmatmul.msk.f32.gmra.mxu3 %vm957_vm1, %v819_v18  ;;  %2784 = vpush %v2563_v20  ;;  %s3109_s2 = scalar_lea.vmem %s3082_s15, %s372_s5  ;;  %s3111_s7 = sld [smem:[#allocation5 + %s506_s25]]  ;;  %v362_v33 = vld [vmem:[%s3099_s17] sm:$0xff]  ;;  %v363_v34 = vld [vmem:[%s3099_s17 + $0x8] sm:$0xff]  ;;  %v364_v35 = vld [vmem:[%s3099_s17 + $0x10] sm:$0xf] }
  0x33   : > { %s437_s13 = smul.u32 24, %s3084_s18  ;;  %s3118_s26 = scalar_lea.vmem %s3082_s15, %s399_s28  ;;  %v374_v36 = vld [vmem:[%s3109_s2] sm:$0xff]  ;;  %v375_v37 = vld [vmem:[%s3109_s2 + $0x8] sm:$0xff]  ;;  %v376_v38 = vld [vmem:[%s3109_s2 + $0x10] sm:$0xf] }
  0x34   : > { %s449_s23 = smul.u32 24, %s3088_s3  ;;  %s3122_s29 = scalar_lea.vmem %s3082_s15, %s411_s10  ;;  %v401_v40 = vld [vmem:[%s3118_s26] sm:$0xff]  ;;  %v402_v41 = vld [vmem:[%s3118_s26 + $0x8] sm:$0xff]  ;;  %v403_v42 = vld [vmem:[%s3118_s26 + $0x10] sm:$0xf] }
  0x35   : > { %s475_s11 = smul.u32 24, %s3091_s24  ;;  %s3129_s25 = sld [smem:[#allocation4 + %s544_s21]]  ;;  %v413_v47 = vld [vmem:[%s3122_s29] sm:$0xff]  ;;  %v414_v52 = vld [vmem:[%s3122_s29 + $0x8] sm:$0xff]  ;;  %v415_v53 = vld [vmem:[%s3122_s29 + $0x10] sm:$0xf] }
  0x36   : > { %s487_s1 = smul.u32 24, %s3093_s6  ;;  %s3134_s3 = scalar_lea.vmem %s3082_s15, %s437_s13 }
  0x37   : > { %s582_s18 = sadd.s32 6, %s3004_s22  ;;  %s3138_s6 = scalar_lea.vmem %s3082_s15, %s449_s23  ;;  %v439_v59 = vld [vmem:[%s3134_s3] sm:$0xff]  ;;  %v440_v60 = vld [vmem:[%s3134_s3 + $0x8] sm:$0xff]  ;;  %v441_v61 = vld [vmem:[%s3134_s3 + $0x10] sm:$0xf] }
  0x38   : > { %s3149_s13 = scalar_lea.vmem %s3082_s15, %s475_s11  ;;  %s513_s19 = smul.u32 24, %s3106_s14  ;;  %v451_v2 = vld [vmem:[%s3138_s6] sm:$0xff]  ;;  %v452_v3 = vld [vmem:[%s3138_s6 + $0x8] sm:$0xff]  ;;  %v453_v4 = vld [vmem:[%s3138_s6 + $0x10] sm:$0xf] }
  0x39   : > { %2599 = vmatmul.msk.f32.gmra.mxu1 %vm957_vm1, %v812_v21  ;;  %s3158_s21 = scalar_lea.vmem %s3082_s15, %s487_s1  ;;  %s525_s23 = smul.u32 24, %s3111_s7  ;;  %v477_v9 = vld [vmem:[%s3149_s13] sm:$0xff]  ;;  %v478_v10 = vld [vmem:[%s3149_s13 + $0x8] sm:$0xff]  ;;  %v479_v15 = vld [vmem:[%s3149_s13 + $0x10] sm:$0xf] }
  0x3a   : > { %2607 = vmatmul.msk.f32.gmra.mxu3 %vm957_vm1, %v820_v22  ;;  %s3164_s11 = sld [smem:[#allocation4 + %s582_s18]]  ;;  %s3175_s17 = scalar_lea.vmem %s3082_s15, %s513_s19  ;;  %v489_v16 = vld [vmem:[%s3158_s21] sm:$0xff]  ;;  %v490_v17 = vld [vmem:[%s3158_s21 + $0x8] sm:$0xff]  ;;  %v491_v22 = vld [vmem:[%s3158_s21 + $0x10] sm:$0xf] }
  0x3b   : > { %s3169_s1 = sld [smem:[#allocation5 + %s582_s18]]  ;;  %s551_s18 = smul.u32 24, %s3129_s25  ;;  %v517_v28 = vld [vmem:[%s3175_s17 + $0x10] sm:$0xf] }
  0x3c   : > { %s3191_s14 = scalar_lea.vmem %s3082_s15, %s525_s23  ;;  %s563_s3 = smul.u32 24, %s3140_s0 }
  0x3d   : > { %s3207_s23 = scalar_lea.vmem %s3082_s15, %s551_s18 }
  0x40   : > { %s589_s13 = smul.u32 24, %s3164_s11 }
  0x41   : > { %2600 = vmatmul.msk.f32.gmra.mxu1 %vm957_vm1, %v813_v23  ;;  %v515_v23 = vld [vmem:[%s3175_s17] sm:$0xff] }
  0x42   : > { %2608 = vmatmul.msk.f32.gmra.mxu3 %vm957_vm1, %v821_v24  ;;  %v516_v24 = vld [vmem:[%s3175_s17 + $0x8] sm:$0xff]  ;;  %s3244_s18 = scalar_lea.vmem %s3082_s15, %s589_s13  ;;  %s658_s13 = sadd.s32 8, %s3004_s22 }
  0x49   : > { %2601 = vmatmul.msk.f32.gmra.mxu1 %vm957_vm1, %v814_v26 }
  0x4a   : > { %2609 = vmatmul.msk.f32.gmra.mxu3 %vm957_vm1, %v822_v27 }
  0x51   : > { %2602 = vmatmul.msk.f32.gmra.mxu1 %vm957_vm1, %v815_v31 }
  0x52   : > { %2610 = vmatmul.msk.f32.gmra.mxu3 %vm957_vm1, %v823_v32 }
  0x54   : > { %s2755_s24 = spop %2754 }
  0x55   : > { %v367_v39 = vstv %s2755_s24  ;;  %s2757_s28 = spop %2756  ;;  %s620_s24 = sadd.s32 7, %s3004_s22 }
  0x56   : > { %v369_v43 = vmul.f32 %v367_v39, %v362_v33  ;;  %v370_v44 = vmul.f32 %v367_v39, %v363_v34  ;;  %v371_v45 = vmul.f32 %v367_v39, %v364_v35  ;;  %v379_v46 = vstv %s2757_s28  ;;  %s2759_s2 = spop %2758  ;;  %v816_v34 = vld [vmem:[%s3051_s16 + $0x30] sm:$0xff]  ;;  %s3235_s0 = sld [smem:[#allocation4 + %s620_s24]] }
  0x57   : > { %v381_v48 = vmul.f32 %v379_v46, %v374_v36  ;;  %v382_v49 = vmul.f32 %v379_v46, %v375_v37  ;;  %v383_v50 = vmul.f32 %v379_v46, %v376_v38  ;;  %v406_v51 = vstv %s2759_s2  ;;  %s2761_s26 = spop %2760  ;;  %s601_s2 = smul.u32 24, %s3169_s1  ;;  %v824_v35 = vld [vmem:[%s3051_s16 + $0x70] sm:$0xff] }
  0x58   : > { %v408_v55 = vmul.f32 %v406_v51, %v401_v40  ;;  %v409_v56 = vmul.f32 %v406_v51, %v402_v41  ;;  %v410_v57 = vmul.f32 %v406_v51, %v403_v42  ;;  %v418_v58 = vstv %s2761_s26  ;;  %s2763_s19 = spop %2762  ;;  %s3225_s26 = scalar_lea.vmem %s3082_s15, %s563_s3  ;;  %v527_v40 = vld [vmem:[%s3191_s14] sm:$0xff]  ;;  %v528_v41 = vld [vmem:[%s3191_s14 + $0x8] sm:$0xff]  ;;  %v529_v42 = vld [vmem:[%s3191_s14 + $0x10] sm:$0xf] }
  0x59   : > { %v384_v62 = vadd.f32 %v381_v48, %v369_v43  ;;  %v385_v63 = vadd.f32 %v382_v49, %v370_v44  ;;  %v386_v0 = vadd.f32 %v383_v50, %v371_v45  ;;  %v420_v1 = vmul.f32 %v418_v58, %v413_v47  ;;  %s2765_s29 = spop %2764  ;;  %v553_v47 = vld [vmem:[%s3207_s23] sm:$0xff]  ;;  %v554_v48 = vld [vmem:[%s3207_s23 + $0x8] sm:$0xff]  ;;  %v555_v49 = vld [vmem:[%s3207_s23 + $0x10] sm:$0xf]  ;;  %2603 = vmatmul.msk.f32.gmra.mxu1 %vm957_vm1, %v816_v34  ;;  %s3256_s5 = scalar_lea.vmem %s3082_s15, %s601_s2 }
  0x5a   : > { %v421_v5 = vmul.f32 %v418_v58, %v414_v52  ;;  %v422_v6 = vmul.f32 %v418_v58, %v415_v53  ;;  %v444_v7 = vstv %s2763_s19  ;;  %v456_v8 = vstv %s2765_s29  ;;  %s2767_s7 = spop %2766  ;;  %2611 = vmatmul.msk.f32.gmra.mxu3 %vm957_vm1, %v824_v35  ;;  %v565_v54 = vld [vmem:[%s3225_s26] sm:$0xff]  ;;  %s3260_s11 = sld [smem:[#allocation5 + %s620_s24]] }
  0x5b   : > { %388 = vst.msk [vmem:[#allocation2] sm:$0xff] %vm387_vm2, %v384_v62  ;;  %v423_v11 = vadd.f32 %v420_v1, %v408_v55  ;;  %v446_v12 = vmul.f32 %v444_v7, %v439_v59  ;;  %v447_v13 = vmul.f32 %v444_v7, %v440_v60  ;;  %v448_v14 = vmul.f32 %v444_v7, %v441_v61  ;;  %s2769_s6 = spop %2768  ;;  %v566_v60 = vld [vmem:[%s3225_s26 + $0x8] sm:$0xff]  ;;  %v567_v61 = vld [vmem:[%s3225_s26 + $0x10] sm:$0xf] }
  0x5c   : > { %389 = vst.msk [vmem:[#allocation2 + $0x8] sm:$0xff] %vm387_vm2, %v385_v63  ;;  %v424_v18 = vadd.f32 %v421_v5, %v409_v56  ;;  %v425_v19 = vadd.f32 %v422_v6, %v410_v57  ;;  %v458_v20 = vmul.f32 %v456_v8, %v451_v2  ;;  %v459_v21 = vmul.f32 %v456_v8, %v452_v3  ;;  %s2771_s28 = spop %2770  ;;  %v591_v2 = vld [vmem:[%s3244_s18] sm:$0xff]  ;;  %v592_v3 = vld [vmem:[%s3244_s18 + $0x8] sm:$0xff]  ;;  %s627_s19 = smul.u32 24, %s3235_s0 }
  0x5d   : > { %391 = vst.msk [vmem:[#allocation2 + $0x10] sm:$0xf] %vm390_vm3, %v386_v0  ;;  %v460_v25 = vmul.f32 %v456_v8, %v453_v4  ;;  %v482_v26 = vstv %s2767_s7  ;;  %v494_v27 = vstv %s2769_s6  ;;  %v520_v29 = vstv %s2771_s28  ;;  %s3216_s25 = spop %2772  ;;  %v593_v8 = vld [vmem:[%s3244_s18 + $0x10] sm:$0xf]  ;;  %s660_s0 = sld [smem:[#allocation5 + %s658_s13]] }
  0x5e   : > { %427 = vst.msk [vmem:[#allocation2 + $0x18] sm:$0xff] %vm387_vm2, %v423_v11  ;;  %v461_v30 = vadd.f32 %v458_v20, %v446_v12  ;;  %v462_v31 = vadd.f32 %v459_v21, %v447_v13  ;;  %v484_v32 = vmul.f32 %v482_v26, %v477_v9  ;;  %v485_v33 = vmul.f32 %v482_v26, %v478_v10  ;;  %s2775_s21 = spop %2774  ;;  %v603_v9 = vld [vmem:[%s3256_s5] sm:$0xff]  ;;  %v604_v10 = vld [vmem:[%s3256_s5 + $0x8] sm:$0xff]  ;;  %s628_s29 = scalar_lea.vmem %s3082_s15, %s627_s19 }
  0x5f   : > { %428 = vst.msk [vmem:[#allocation2 + $0x20] sm:$0xff] %vm387_vm2, %v424_v18  ;;  %v463_v36 = vadd.f32 %v460_v25, %v448_v14  ;;  %v486_v37 = vmul.f32 %v482_v26, %v479_v15  ;;  %v496_v38 = vmul.f32 %v494_v27, %v489_v16  ;;  %v497_v39 = vmul.f32 %v494_v27, %v490_v17  ;;  %s3231_s17 = spop %2776  ;;  %v605_v14 = vld [vmem:[%s3256_s5 + $0x10] sm:$0xf]  ;;  %v817_v16 = vld [vmem:[%s3051_s16 + $0x38] sm:$0xff]  ;;  %v629_v34 = vld [vmem:[%s628_s29] sm:$0xff] }
  0x60   : > { %429 = vst.msk [vmem:[#allocation2 + $0x28] sm:$0xf] %vm390_vm3, %v425_v19  ;;  %v498_v43 = vmul.f32 %v494_v27, %v491_v22  ;;  %v522_v44 = vmul.f32 %v520_v29, %v515_v23  ;;  %v523_v45 = vmul.f32 %v520_v29, %v516_v24  ;;  %v524_v46 = vmul.f32 %v520_v29, %v517_v28  ;;  %s3246_s10 = spop %2778  ;;  %v825_v17 = vld [vmem:[%s3051_s16 + $0x78] sm:$0xff]  ;;  %s639_s16 = smul.u32 24, %s3260_s11  ;;  %v630_v35 = vld [vmem:[%s628_s29 + $0x8] sm:$0xff] }
  0x61   : > { %465 = vst.msk [vmem:[#allocation2 + $0x30] sm:$0xff] %vm387_vm2, %v461_v30  ;;  %v499_v50 = vadd.f32 %v496_v38, %v484_v32  ;;  %v500_v51 = vadd.f32 %v497_v39, %v485_v33  ;;  %v532_v52 = vstv %s3216_s25  ;;  %v558_v53 = vstv %s2775_s21  ;;  %s2781_s1 = spop %2780  ;;  %2604 = vmatmul.msk.f32.gmra.mxu1 %vm957_vm1, %v817_v16  ;;  %v631_v38 = vld [vmem:[%s628_s29 + $0x10] sm:$0xf] }
  0x62   : > { %466 = vst.msk [vmem:[#allocation2 + $0x38] sm:$0xff] %vm387_vm2, %v462_v31  ;;  %v501_v55 = vadd.f32 %v498_v43, %v486_v37  ;;  %v534_v56 = vmul.f32 %v532_v52, %v527_v40  ;;  %v535_v57 = vmul.f32 %v532_v52, %v528_v41  ;;  %v536_v58 = vmul.f32 %v532_v52, %v529_v42  ;;  %v827_v59 = vld [vmem:[#allocation2] sm:$0xff]  ;;  %s2783_s14 = spop %2782  ;;  %s640_s7 = scalar_lea.vmem %s3082_s15, %s639_s16 }
  0x63   : > { %467 = vst.msk [vmem:[#allocation2 + $0x40] sm:$0xf] %vm390_vm3, %v463_v36  ;;  %2580 = vmatmul.msk.f32.vlgmr.msra.gmra.mxu0 %vm387_vm2, %v827_v59  ;;  %v560_v62 = vmul.f32 %v558_v53, %v553_v47  ;;  %v561_v63 = vmul.f32 %v558_v53, %v554_v48  ;;  %v562_v0 = vmul.f32 %v558_v53, %v555_v49  ;;  %v570_v1 = vstv %s3231_s17  ;;  %v828_v28 = vld [vmem:[#allocation2 + $0x8] sm:$0xff]  ;;  %s2785_s24 = spop %2784  ;;  %v641_v41 = vld [vmem:[%s640_s7] sm:$0xff]  ;;  %s659_s17 = sld [smem:[#allocation4 + %s658_s13]] }
  0x64   : > { %503 = vst.msk [vmem:[#allocation2 + $0x48] sm:$0xff] %vm387_vm2, %v499_v50  ;;  %v537_v4 = vadd.f32 %v534_v56, %v522_v44  ;;  %v538_v5 = vadd.f32 %v535_v57, %v523_v45  ;;  %v539_v6 = vadd.f32 %v536_v58, %v524_v46  ;;  %v572_v7 = vmul.f32 %v570_v1, %v565_v54  ;;  %v1222_v32 = vld [vmem:[#allocation2 + $0x4] sm:$0xff]  ;;  %v643_v44 = vld [vmem:[%s640_s7 + $0x10] sm:$0xf]  ;;  %s696_s16 = sadd.s32 9, %s3004_s22 }
  0x65   : > { %504 = vst.msk [vmem:[#allocation2 + $0x50] sm:$0xff] %vm387_vm2, %v500_v51  ;;  %v573_v11 = vmul.f32 %v570_v1, %v566_v60  ;;  %v574_v12 = vmul.f32 %v570_v1, %v567_v61  ;;  %v596_v13 = vstv %s3246_s10  ;;  %v608_v15 = vstv %s2781_s1  ;;  %2612 = vmatmul.msk.f32.gmra.mxu3 %vm957_vm1, %v825_v17  ;;  %v642_v42 = vld [vmem:[%s640_s7 + $0x8] sm:$0xff]  ;;  %v829_v47 = vld [vmem:[#allocation2 + $0x18] sm:$0xff]  ;;  %s677_s10 = smul.u32 24, %s660_s0  ;;  %s698_s29 = sld [smem:[#allocation5 + %s696_s16]] }
  0x66   : > { %505 = vst.msk [vmem:[#allocation2 + $0x58] sm:$0xf] %vm390_vm3, %v501_v55  ;;  %v575_v18 = vadd.f32 %v572_v7, %v560_v62  ;;  %v598_v19 = vmul.f32 %v596_v13, %v591_v2  ;;  %v599_v20 = vmul.f32 %v596_v13, %v592_v3  ;;  %v600_v22 = vmul.f32 %v596_v13, %v593_v8  ;;  %v2565_v49 = vld [vmem:[%s3014_s27 + $0x8] sm:$0x1]  ;;  %v1223_v55 = vld [vmem:[#allocation2 + $0xc] sm:$0xff]  ;;  %v830_v57 = vld [vmem:[#allocation2 + $0x20] sm:$0xff] }
  0x67   : > { %541 = vst.msk [vmem:[#allocation2 + $0x60] sm:$0xff] %vm387_vm2, %v537_v4  ;;  %v576_v21 = vadd.f32 %v573_v11, %v561_v63  ;;  %v610_v23 = vmul.f32 %v608_v15, %v603_v9  ;;  %v611_v24 = vmul.f32 %v608_v15, %v604_v10  ;;  %v577_v25 = vadd.f32 %v574_v12, %v562_v0  ;;  %v2567_v50 = vld [vmem:[%s3020_s30 + $0x8] sm:$0x1]  ;;  %v1224_v59 = vld [vmem:[#allocation2 + $0x1c] sm:$0xff]  ;;  %v2569_v61 = vld [vmem:[%s3014_s27 + $0x9] sm:$0x1]  ;;  %s678_s1 = scalar_lea.vmem %s3082_s15, %s677_s10 }
  0x68   : > { %542 = vst.msk [vmem:[#allocation2 + $0x68] sm:$0xff] %vm387_vm2, %v538_v5  ;;  %v612_v26 = vmul.f32 %v608_v15, %v605_v14  ;;  %v634_v36 = vstv %s2783_s14  ;;  %v646_v37 = vstv %s2785_s24  ;;  %v2571_v62 = vld [vmem:[%s3020_s30 + $0x9] sm:$0x1]  ;;  %v831_v63 = vld [vmem:[#allocation2 + $0x30] sm:$0xff]  ;;  %v2715_v11 = vld [vmem:[%s3998_s4 + $0x38] sm:$0xff]  ;;  %s697_s14 = sld [smem:[#allocation4 + %s696_s16]] }
  0x69   : > { %543 = vst.msk [vmem:[#allocation2 + $0x70] sm:$0xf] %vm390_vm3, %v539_v6  ;;  %v613_v27 = vadd.f32 %v610_v23, %v598_v19  ;;  %v614_v29 = vadd.f32 %v611_v24, %v599_v20  ;;  %v3299_v33 = vld [vmem:[#allocation2 + $0x32] sm:$0xff]  ;;  %v636_v39 = vmul.f32 %v634_v36, %v629_v34  ;;  %v637_v40 = vmul.f32 %v634_v36, %v630_v35  ;;  %v1225_v1 = vld [vmem:[#allocation2 + $0x24] sm:$0xff]  ;;  %s665_s18 = smul.u32 24, %s659_s17 }
  0x6a   : > { %579 = vst.msk [vmem:[#allocation2 + $0x78] sm:$0xff] %vm387_vm2, %v575_v18  ;;  %v615_v30 = vadd.f32 %v612_v26, %v600_v22  ;;  %2665 = vmatmul.msk.f32.vlgmr.msrb.gmra.mxu1 %vm387_vm2, %v3299_v33  ;;  %v638_v43 = vmul.f32 %v634_v36, %v631_v38  ;;  %v648_v45 = vmul.f32 %v646_v37, %v641_v41  ;;  %v3315_v56 = vld [vmem:[#allocation2 + $0x3a] sm:$0xff]  ;;  %v2681_v5 = vld [vmem:[%s3998_s4 + $0x28] sm:$0xff]  ;;  %v2698_v6 = vld [vmem:[%s3998_s4 + $0x30] sm:$0xff] }
  0x6b   : > { %580 = vst.msk [vmem:[#allocation2 + $0x80] sm:$0xff] %vm387_vm2, %v576_v21  ;;  %2581 = vmatmul.msk.f32.gmra.mxu0 %vm387_vm2, %v828_v28  ;;  %v649_v46 = vmul.f32 %v646_v37, %v642_v42  ;;  %v650_v48 = vmul.f32 %v646_v37, %v643_v44  ;;  %v3342_v3 = vld [vmem:[#allocation2 + $0x38] sm:$0xff]  ;;  %1891 = vmatpush.msra.mxu3 %v2698_v6  ;;  %v3364_v9 = vld [vmem:[#allocation2 + $0x48] sm:$0xff]  ;;  %v2732_v12 = vld [vmem:[%s3998_s4 + $0x40] sm:$0xff]  ;;  %s666_s5 = scalar_lea.vmem %s3082_s15, %s665_s18  ;;  %s715_s7 = smul.u32 24, %s698_s29 }
  0x6c   : > { %581 = vst.msk [vmem:[#allocation2 + $0x88] sm:$0xf] %vm390_vm3, %v577_v25  ;;  %v651_v51 = vadd.f32 %v648_v45, %v636_v39  ;;  %v3325_v60 = vld [vmem:[#allocation2 + $0x4a] sm:$0xff]  ;;  %v3356_v7 = vld [vmem:[#allocation2 + $0x34] sm:$0xff]  ;;  %v3379_v13 = vld [vmem:[#allocation2 + $0x3c] sm:$0xff]  ;;  %2038 = vmatpush.msra.mxu0 %v2715_v11  ;;  %2185 = vmatpush.msra.mxu1 %v2732_v12  ;;  %s772_s18 = sadd.s32 11, %s3004_s22 }
  0x6d   : > { %617 = vst.msk [vmem:[#allocation2 + $0x90] sm:$0xff] %vm387_vm2, %v613_v27  ;;  %2631 = vmatmul.msk.f32.vlgmr.msrb.gmra.mxu3 %vm387_vm2, %v1222_v32  ;;  %v652_v52 = vadd.f32 %v649_v46, %v637_v40  ;;  %v653_v53 = vadd.f32 %v650_v48, %v638_v43  ;;  %v3337_v2 = vld [vmem:[#allocation2 + $0x52] sm:$0xff]  ;;  %v667_v22 = vld [vmem:[%s666_s5] sm:$0xff]  ;;  %v668_v23 = vld [vmem:[%s666_s5 + $0x8] sm:$0xff]  ;;  %s716_s23 = scalar_lea.vmem %s3082_s15, %s715_s7  ;;  %s3789_s10 = sld [smem:[#allocation4 + %s772_s18]] }
  0x6e   : > { %v3294_v31 = vld [vmem:[#allocation2 + $0x60] sm:$0xff]  ;;  %618 = vst.msk [vmem:[#allocation2 + $0x98] sm:$0xff] %vm387_vm2, %v614_v29  ;;  %v3387_v15 = vld [vmem:[#allocation2 + $0x50] sm:$0xff]  ;;  %s703_s24 = smul.u32 24, %s697_s14 }
  0x6f   : > { %2588 = vmatmul.msk.f32.vlgmr.msra.gmra.mxu2 %vm387_vm2, %v3294_v31  ;;  %619 = vst.msk [vmem:[#allocation2 + $0xa0] sm:$0xf] %vm390_vm3, %v615_v30  ;;  %v3309_v54 = vld [vmem:[#allocation2 + $0x68] sm:$0xff]  ;;  %v3409_v20 = vld [vmem:[#allocation2 + $0x54] sm:$0xff]  ;;  %v669_v24 = vld [vmem:[%s666_s5 + $0x10] sm:$0xf] }
  0x70   : > { %2786 = vpush %v2565_v49  ;;  %v3358_v8 = vld [vmem:[#allocation2 + $0x62] sm:$0xff]  ;;  %1744 = vmatpush.msra.mxu2 %v2681_v5  ;;  %v3381_v14 = vld [vmem:[#allocation2 + $0x6a] sm:$0xff]  ;;  %s704_s6 = scalar_lea.vmem %s3082_s15, %s703_s24  ;;  %s4036_s24 = sshll.u32 %s3041_s12, 3 }
  0x71   : > { %2788 = vpush %v2567_v50  ;;  %v3321_v58 = vld [vmem:[#allocation2 + $0x78] sm:$0xff]  ;;  %v3395_v17 = vld [vmem:[#allocation2 + $0x4c] sm:$0xff]  ;;  %v679_v29 = vld [vmem:[%s678_s1] sm:$0xff] }
  0x72   : > { %655 = vst.msk [vmem:[#allocation2 + $0xa8] sm:$0xff] %vm387_vm2, %v651_v51  ;;  %2666 = vmatmul.msk.f32.gmra.mxu1 %vm387_vm2, %v3315_v56  ;;  %v3333_v0 = vld [vmem:[#allocation2 + $0x80] sm:$0xff]  ;;  %v680_v30 = vld [vmem:[%s678_s1 + $0x8] sm:$0xff]  ;;  %v681_v32 = vld [vmem:[%s678_s1 + $0x10] sm:$0xf] }
  0x73   : > { %2582 = vmatmul.msk.f32.gmra.mxu0 %vm387_vm2, %v829_v47  ;;  %656 = vst.msk [vmem:[#allocation2 + $0xb0] sm:$0xff] %vm387_vm2, %v652_v52  ;;  %v3397_v18 = vld [vmem:[#allocation2 + $0x7a] sm:$0xff]  ;;  %v3411_v21 = vld [vmem:[#allocation2 + $0x82] sm:$0xff]  ;;  %v1076_v46 = vld [vmem:[#allocation2 + $0xa] sm:$0xff]  ;;  %s779_s5 = smul.u32 24, %s3789_s10 }
  0x74   : > { %657 = vst.msk [vmem:[#allocation2 + $0xb8] sm:$0xf] %vm390_vm3, %v653_v53  ;;  %v3346_v4 = vld [vmem:[#allocation2 + $0x90] sm:$0xff]  ;;  %v1075_v42 = vld [vmem:[#allocation2 + $0x2] sm:$0xff] }
  0x75   : > { %2632 = vmatmul.msk.f32.gmra.mxu3 %vm387_vm2, %v1223_v55  ;;  %2790 = vpush %v2569_v61  ;;  %v3369_v10 = vld [vmem:[#allocation2 + $0x98] sm:$0xff]  ;;  %v3427_v43 = vld [vmem:[#allocation2 + $0x64] sm:$0xff]  ;;  %v3443_v48 = vld [vmem:[#allocation2 + $0x6c] sm:$0xff] }
  0x76   : > { %2792 = vpush %v2571_v62  ;;  %v3429_v44 = vld [vmem:[#allocation2 + $0x92] sm:$0xff]  ;;  %v3445_v49 = vld [vmem:[#allocation2 + $0x9a] sm:$0xff]  ;;  %v706_v51 = vld [vmem:[%s704_s6 + $0x8] sm:$0xff] }
  0x77   : > { %2589 = vmatmul.msk.f32.gmra.mxu2 %vm387_vm2, %v3309_v54  ;;  %v705_v50 = vld [vmem:[%s704_s6] sm:$0xff]  ;;  %v707_v52 = vld [vmem:[%s704_s6 + $0x10] sm:$0xf]  ;;  %v718_v62 = vld [vmem:[%s716_s23 + $0x8] sm:$0xff]  ;;  %s3919_s6 = scalar_lea.vmem %s4003_s9, %s4036_s24 }
  0x78   : > { %v717_v61 = vld [vmem:[%s716_s23] sm:$0xff] }
  0x79   : > { %v3391_v16 = vld [vmem:[#allocation2 + $0xa8] sm:$0xff] }
  0x7a   : > { %2667 = vmatmul.msk.f32.gmra.mxu1 %vm387_vm2, %v3325_v60  ;;  %v3407_v19 = vld [vmem:[#allocation2 + $0xb0] sm:$0xff] }
  0x7b   : > { %2583 = vmatmul.msk.f32.gmra.mxu0 %vm387_vm2, %v830_v57 }
  0x7d   : > { %2633 = vmatmul.msk.f32.gmra.mxu3 %vm387_vm2, %v1224_v59 }
  0x7f   : > { %2590 = vmatmul.msk.f32.gmra.mxu2 %vm387_vm2, %v3321_v58 }
  0x82   : > { %2668 = vmatmul.msk.f32.gmra.mxu1 %vm387_vm2, %v3337_v2 }
  0x83   : > { %2584 = vmatmul.msk.f32.gmra.mxu0 %vm387_vm2, %v831_v63 }
  0x85   : > { %2634 = vmatmul.msk.f32.gmra.mxu3 %vm387_vm2, %v1225_v1 }
  0x87   : > { %2591 = vmatmul.msk.f32.gmra.mxu2 %vm387_vm2, %v3333_v0 }
  0x8a   : > { %2669 = vmatmul.msk.f32.gmra.mxu1 %vm387_vm2, %v3358_v8 }
  0x8b   : > { %2585 = vmatmul.msk.f32.gmra.mxu0 %vm387_vm2, %v3342_v3 }
  0x8d   : > { %2635 = vmatmul.msk.f32.gmra.mxu3 %vm387_vm2, %v3356_v7 }
  0x8f   : > { %2592 = vmatmul.msk.f32.gmra.mxu2 %vm387_vm2, %v3346_v4 }
  0x92   : > { %2670 = vmatmul.msk.f32.gmra.mxu1 %vm387_vm2, %v3381_v14 }
  0x93   : > { %2586 = vmatmul.msk.f32.gmra.mxu0 %vm387_vm2, %v3364_v9 }
  0x95   : > { %2636 = vmatmul.msk.f32.gmra.mxu3 %vm387_vm2, %v3379_v13 }
  0x97   : > { %2593 = vmatmul.msk.f32.gmra.mxu2 %vm387_vm2, %v3369_v10 }
  0x9a   : > { %2671 = vmatmul.msk.f32.gmra.mxu1 %vm387_vm2, %v3397_v18 }
  0x9b   : > { %2587 = vmatmul.msk.f32.gmra.mxu0 %vm387_vm2, %v3387_v15 }
  0x9d   : > { %2637 = vmatmul.msk.f32.gmra.mxu3 %vm387_vm2, %v3395_v17 }
  0x9f   : > { %2594 = vmatmul.msk.f32.gmra.mxu2 %vm387_vm2, %v3391_v16 }
  0xa1   : > { %s2787_s11 = spop %2786 }
  0xa2   : > { %s2789_s19 = spop %2788  ;;  %v672_v25 = vstv %s2787_s11  ;;  %2672 = vmatmul.msk.f32.gmra.mxu1 %vm387_vm2, %v3411_v21 }
  0xa3   : > { %2648 = vmatmul.msk.f32.vlgmr.msrb.gmra.mxu0 %vm387_vm2, %v831_v63  ;;  %v674_v26 = vmul.f32 %v672_v25, %v667_v22  ;;  %v675_v27 = vmul.f32 %v672_v25, %v668_v23  ;;  %v676_v28 = vmul.f32 %v672_v25, %v669_v24  ;;  %v684_v34 = vstv %s2789_s19  ;;  %v719_v63 = vld [vmem:[%s716_s23 + $0x10] sm:$0xf]  ;;  %v1077_v23 = vld [vmem:[#allocation2 + $0x1a] sm:$0xff]  ;;  %s780_s19 = scalar_lea.vmem %s3082_s15, %s779_s5 }
  0xa4   : > { %v686_v35 = vmul.f32 %v684_v34, %v679_v29  ;;  %v687_v36 = vmul.f32 %v684_v34, %v680_v30  ;;  %v688_v37 = vmul.f32 %v684_v34, %v681_v32  ;;  %v3462_v25 = vld [vmem:[#allocation2 + $0x7c] sm:$0xff]  ;;  %v3477_v29 = vld [vmem:[#allocation2 + $0xb2] sm:$0xff] }
  0xa5   : > { %2638 = vmatmul.msk.f32.gmra.mxu3 %vm387_vm2, %v3409_v20 }
  0xa6   : > { %v689_v38 = vadd.f32 %v686_v35, %v674_v26  ;;  %v690_v39 = vadd.f32 %v687_v36, %v675_v27  ;;  %v691_v40 = vadd.f32 %v688_v37, %v676_v28  ;;  %v3421_v41 = vpop.f32.mrf.mxu1  ;;  %s2791_s3 = spop %2790  ;;  %v3464_v26 = vld [vmem:[#allocation2 + $0xaa] sm:$0xff]  ;;  %v1078_v27 = vld [vmem:[#allocation2 + $0x22] sm:$0xff]  ;;  %v3493_v35 = vld [vmem:[#allocation2 + $0x94] sm:$0xff] }
  0xa7   : > { %2595 = vmatmul.msk.f32.gmra.mxu2 %vm387_vm2, %v3407_v19  ;;  %s2793_s28 = spop %2792  ;;  %v710_v53 = vstv %s2791_s3  ;;  %v3475_v28 = vld [vmem:[#allocation2 + $0x84] sm:$0xff] }
  0xa8   : > { %693 = vst.msk [vmem:[#allocation2 + $0xc0] sm:$0xff] %vm387_vm2, %v689_v38  ;;  %v712_v55 = vmul.f32 %v710_v53, %v705_v50  ;;  %v713_v57 = vmul.f32 %v710_v53, %v706_v51  ;;  %v714_v59 = vmul.f32 %v710_v53, %v707_v52  ;;  %v722_v1 = vstv %s2793_s28  ;;  %v3543_v52 = vld [vmem:[#allocation2 + $0xb4] sm:$0xff] }
  0xa9   : > { %694 = vst.msk [vmem:[#allocation2 + $0xc8] sm:$0xff] %vm387_vm2, %v690_v39  ;;  %v725_v5 = vmul.f32 %v722_v1, %v718_v62  ;;  %v726_v6 = vmul.f32 %v722_v1, %v719_v63 }
  0xaa   : > { %695 = vst.msk [vmem:[#allocation2 + $0xd0] sm:$0xf] %vm390_vm3, %v691_v40  ;;  %2673 = vmatmul.msk.f32.gmra.mxu1 %vm387_vm2, %v3429_v44 }
  0xab   : > { %2649 = vmatmul.msk.f32.gmra.mxu0 %vm387_vm2, %v3342_v3  ;;  %v724_v3 = vmul.f32 %v722_v1, %v717_v61  ;;  %v728_v12 = vadd.f32 %v725_v5, %v713_v57  ;;  %v729_v22 = vadd.f32 %v726_v6, %v714_v59 }
  0xad   : > { %2639 = vmatmul.msk.f32.gmra.mxu3 %vm387_vm2, %v3427_v43  ;;  %v3435_v45 = vpop.f32.mrf.mxu3  ;;  %v727_v11 = vadd.f32 %v724_v3, %v712_v55  ;;  %732 = vst.msk [vmem:[#allocation2 + $0xe0] sm:$0xff] %vm387_vm2, %v728_v12 }
  0xae   : > { %v3441_v47 = vpop.f32.mrf.mxu1  ;;  %733 = vst.msk [vmem:[#allocation2 + $0xe8] sm:$0xf] %vm390_vm3, %v729_v22 }
  0xaf   : > { %2614 = vmatmul.msk.f32.vlgmr.msrb.gmra.mxu2 %vm387_vm2, %v1075_v42  ;;  %731 = vst.msk [vmem:[#allocation2 + $0xd8] sm:$0xff] %vm387_vm2, %v727_v11  ;;  %v1381_v5 = vld [vmem:[#allocation2 + $0xc0] sm:$0xff] }
  0xb0   : > { %v3489_v34 = vld [vmem:[#allocation2 + $0xc2] sm:$0xff] }
  0xb1   : > { %v3505_v38 = vld [vmem:[#allocation2 + $0xca] sm:$0xff] }
  0xb2   : > { %2674 = vmatmul.msk.f32.gmra.mxu1 %vm387_vm2, %v3445_v49  ;;  %v3607_v22 = vld [vmem:[#allocation2 + $0xc8] sm:$0xff] }
  0xb3   : > { %2650 = vmatmul.msk.f32.gmra.mxu0 %vm387_vm2, %v3364_v9 }
  0xb5   : > { %2640 = vmatmul.msk.f32.gmra.mxu3 %vm387_vm2, %v3443_v48  ;;  %v3452_v9 = vpop.f32.mrf.mxu3  ;;  %v3537_v51 = vld [vmem:[#allocation2 + $0xe2] sm:$0xff] }
  0xb6   : > { %v3460_v24 = vpop.f32.mrf.mxu1  ;;  %v3521_v42 = vld [vmem:[#allocation2 + $0xda] sm:$0xff] }
  0xb7   : > { %2615 = vmatmul.msk.f32.gmra.mxu2 %vm387_vm2, %v1076_v46 }
  0xba   : > { %2675 = vmatmul.msk.f32.gmra.mxu1 %vm387_vm2, %v3464_v26 }
  0xbb   : > { %2651 = vmatmul.msk.f32.gmra.mxu0 %vm387_vm2, %v3387_v15 }
  0xbd   : > { %2641 = vmatmul.msk.f32.gmra.mxu3 %vm387_vm2, %v3462_v25  ;;  %v3470_v15 = vpop.f32.mrf.mxu3 }
  0xbe   : > { %v3483_v30 = vpop.f32.mrf.mxu1 }
  0xbf   : > { %2616 = vmatmul.msk.f32.gmra.mxu2 %vm387_vm2, %v1077_v23 }
  0xc2   : > { %2676 = vmatmul.msk.f32.gmra.mxu1 %vm387_vm2, %v3477_v29 }
  0xc3   : > { %2652 = vmatmul.msk.f32.gmra.mxu0 %vm387_vm2, %v3294_v31 }
  0xc5   : > { %2642 = vmatmul.msk.f32.gmra.mxu3 %vm387_vm2, %v3475_v28  ;;  %v3485_v32 = vpop.f32.mrf.mxu3 }
  0xc6   : > { %v3503_v37 = vpop.f32.mrf.mxu1 }
  0xc7   : > { %2617 = vmatmul.msk.f32.gmra.mxu2 %vm387_vm2, %v1078_v27 }
  0xca   : > { %2677 = vmatmul.msk.f32.gmra.mxu1 %vm387_vm2, %v3489_v34 }
  0xcb   : > { %2653 = vmatmul.msk.f32.gmra.mxu0 %vm387_vm2, %v3309_v54 }
  0xcd   : > { %2643 = vmatmul.msk.f32.gmra.mxu3 %vm387_vm2, %v3493_v35  ;;  %v3499_v36 = vpop.f32.mrf.mxu3 }
  0xce   : > { %v3519_v40 = vpop.f32.mrf.mxu1 }
  0xcf   : > { %2618 = vmatmul.msk.f32.gmra.mxu2 %vm387_vm2, %v3299_v33  ;;  %v3509_v33 = vld [vmem:[#allocation2 + $0x9c] sm:$0xff] }
  0xd2   : > { %2678 = vmatmul.msk.f32.gmra.mxu1 %vm387_vm2, %v3505_v38 }
  0xd3   : > { %2654 = vmatmul.msk.f32.gmra.mxu0 %vm387_vm2, %v3321_v58 }
  0xd5   : > { %2644 = vmatmul.msk.f32.gmra.mxu3 %vm387_vm2, %v3509_v33  ;;  %v3515_v39 = vpop.f32.mrf.mxu3 }
  0xd7   : > { %2619 = vmatmul.msk.f32.gmra.mxu2 %vm387_vm2, %v3315_v56  ;;  %v3525_v56 = vld [vmem:[#allocation2 + $0xac] sm:$0xff] }
  0xda   : > { %2679 = vmatmul.msk.f32.gmra.mxu1 %vm387_vm2, %v3521_v42 }
  0xdb   : > { %2655 = vmatmul.msk.f32.gmra.mxu0 %vm387_vm2, %v3333_v0 }
  0xdd   : > { %2645 = vmatmul.msk.f32.gmra.mxu3 %vm387_vm2, %v3525_v56  ;;  %v3535_v50 = vpop.f32.mrf.mxu3 }
  0xdf   : > { %2620 = vmatmul.msk.f32.gmra.mxu2 %vm387_vm2, %v3325_v60  ;;  %v3541_v60 = vpop.f32.mrf.mxu1 }
  0xe0   : > { %v3527_v46 = vpop.f32.mrf.mxu0 }
  0xe2   : > { %2680 = vmatmul.msk.f32.gmra.mxu1 %vm387_vm2, %v3537_v51 }
  0xe3   : > { %2656 = vmatmul.msk.f32.gmra.mxu0 %vm387_vm2, %v3346_v4 }
  0xe5   : > { %2646 = vmatmul.msk.f32.gmra.mxu3 %vm387_vm2, %v3543_v52 }
  0xe7   : > { %2621 = vmatmul.msk.f32.gmra.mxu2 %vm387_vm2, %v3337_v2  ;;  %v3563_v57 = vpop.f32.mrf.mxu1 }
  0xe8   : > { %v3545_v53 = vpop.f32.mrf.mxu0  ;;  %v3553_v55 = vpop.f32.mrf.mxu3 }
  0xea   : > { %2733 = vmatmul.msk.f32.vlgmr.msra.gmra.mxu1 %vm387_vm2, %v3427_v43 }
  0xeb   : > { %2657 = vmatmul.msk.f32.gmra.mxu0 %vm387_vm2, %v3369_v10 }
  0xed   : > { %2699 = vmatmul.msk.f32.vlgmr.msra.gmra.mxu3 %vm387_vm2, %v3294_v31 }
  0xef   : > { %2622 = vmatmul.msk.f32.gmra.mxu2 %vm387_vm2, %v3358_v8  ;;  %v3585_v1 = vpop.f32.mrf.mxu1 }
  0xf0   : > { %v3557_v2 = vpop.f32.mrf.mxu0  ;;  %v3572_v62 = vpop.f32.mrf.mxu3  ;;  %4022 = vst [vmem:[#allocation11_spill] sm:$0xff] %v3585_v1 }
  0xf2   : > { %v933_v59 = vpop.f32.mrf.mxu2  ;;  %2734 = vmatmul.msk.f32.gmra.mxu1 %vm387_vm2, %v3443_v48 }
  0xf3   : > { %v3566_v61 = vadd.f32 %v3435_v45, %v933_v59  ;;  %2658 = vmatmul.msk.f32.gmra.mxu0 %vm387_vm2, %v3391_v16 }
  0xf5   : > { %2700 = vmatmul.msk.f32.gmra.mxu3 %vm387_vm2, %v3309_v54 }
  0xf7   : > { %2623 = vmatmul.msk.f32.gmra.mxu2 %vm387_vm2, %v3381_v14  ;;  %v3601_v11 = vpop.f32.mrf.mxu1 }
  0xf8   : > { %v3574_v63 = vpop.f32.mrf.mxu0  ;;  %v3591_v6 = vpop.f32.mrf.mxu3  ;;  %4023 = vst [vmem:[#allocation12_spill] sm:$0xff] %v3601_v11 }
  0xfa   : > { %v936_v31 = vpop.f32.mrf.mxu2  ;;  %2735 = vmatmul.msk.f32.gmra.mxu1 %vm387_vm2, %v3462_v25 }
  0xfb   : > { %v3581_v45 = vadd.f32 %v3452_v9, %v936_v31  ;;  %2659 = vmatmul.msk.f32.gmra.mxu0 %vm387_vm2, %v3407_v19 }
  0xfd   : > { %2701 = vmatmul.msk.f32.gmra.mxu3 %vm387_vm2, %v3321_v58 }
  0xff   : > { %2624 = vmatmul.msk.f32.gmra.mxu2 %vm387_vm2, %v3397_v18  ;;  %v3622_v27 = vpop.f32.mrf.mxu1 }
 0x100   : > { %v3589_v3 = vpop.f32.mrf.mxu0  ;;  %v3613_v23 = vpop.f32.mrf.mxu3  ;;  %4024 = vst [vmem:[#allocation13_spill] sm:$0xff] %v3622_v27  ;;  %v3643_v27 = vld [vmem:[#allocation2 + $0xe0] sm:$0xff] }
 0x102   : > { %v939_v54 = vpop.f32.mrf.mxu2  ;;  %2736 = vmatmul.msk.f32.gmra.mxu1 %vm387_vm2, %v3475_v28 }
 0x103   : > { %v3598_v9 = vadd.f32 %v3470_v15, %v939_v54  ;;  %2660 = vmatmul.msk.f32.gmra.mxu0 %vm387_vm2, %v1381_v5 }
 0x105   : > { %2702 = vmatmul.msk.f32.gmra.mxu3 %vm387_vm2, %v3333_v0  ;;  %v3626_v0 = vld [vmem:[#allocation2 + $0xd8] sm:$0xff] }
 0x107   : > { %2625 = vmatmul.msk.f32.gmra.mxu2 %vm387_vm2, %v3411_v21 }
 0x108   : > { %v3605_v12 = vpop.f32.mrf.mxu0  ;;  %v3637_v54 = vpop.f32.mrf.mxu3 }
 0x10a   : > { %v942_v58 = vpop.f32.mrf.mxu2  ;;  %2737 = vmatmul.msk.f32.gmra.mxu1 %vm387_vm2, %v3493_v35 }
 0x10b   : > { %v3616_v15 = vadd.f32 %v3485_v32, %v942_v58  ;;  %2661 = vmatmul.msk.f32.gmra.mxu0 %vm387_vm2, %v3607_v22 }
 0x10d   : > { %2703 = vmatmul.msk.f32.gmra.mxu3 %vm387_vm2, %v3346_v4  ;;  %v3649_v4 = vpop.f32.mrf.mxu1 }
 0x10e   : > { %4026 = vst [vmem:[#allocation15_spill] sm:$0xff] %v3649_v4 }
 0x10f   : > { %2626 = vmatmul.msk.f32.gmra.mxu2 %vm387_vm2, %v3429_v44 }
 0x110   : > { %v3624_v59 = vpop.f32.mrf.mxu0  ;;  %v3656_v11 = vpop.f32.mrf.mxu3 }
 0x112   : > { %v945_v32 = vpop.f32.mrf.mxu2  ;;  %2738 = vmatmul.msk.f32.gmra.mxu1 %vm387_vm2, %v3509_v33 }
 0x113   : > { %v3633_v31 = vadd.f32 %v3499_v36, %v945_v32  ;;  %2662 = vmatmul.msk.f32.gmra.mxu0 %vm387_vm2, %v3626_v0 }
 0x115   : > { %4025 = vst [vmem:[#allocation14_spill] sm:$0xff] %v3633_v31  ;;  %2704 = vmatmul.msk.f32.gmra.mxu3 %vm387_vm2, %v3369_v10 }
 0x117   : > { %2627 = vmatmul.msk.f32.gmra.mxu2 %vm387_vm2, %v3445_v49 }
 0x118   : > { %v3641_v58 = vpop.f32.mrf.mxu0 }
 0x11a   : > { %v948_v36 = vpop.f32.mrf.mxu2  ;;  %2739 = vmatmul.msk.f32.gmra.mxu1 %vm387_vm2, %v3525_v56 }
 0x11b   : > { %v3652_v32 = vadd.f32 %v3515_v39, %v948_v36  ;;  %2663 = vmatmul.msk.f32.gmra.mxu0 %vm387_vm2, %v3643_v27  ;;  %v3669_v39 = vpop.f32.mrf.mxu1  ;;  %v2573_v36 = vld [vmem:[%s3014_s27 + $0xa] sm:$0x1] }
 0x11c   : > { %4028 = vst [vmem:[#allocation17_spill] sm:$0xff] %v3669_v39  ;;  %v2579_v39 = vld [vmem:[%s3020_s30 + $0xb] sm:$0x1] }
 0x11d   : > { %4027 = vst [vmem:[#allocation16_spill] sm:$0xff] %v3652_v32  ;;  %2705 = vmatmul.msk.f32.gmra.mxu3 %vm387_vm2, %v3391_v16  ;;  %v2575_v32 = vld [vmem:[%s3020_s30 + $0xa] sm:$0x1]  ;;  %v3675_v16 = vpop.f32.mrf.mxu3 }
 0x11e   : > { %2794 = vpush %v2573_v36  ;;  %v3690_v36 = vld [vmem:[#allocation2 + $0xc4] sm:$0xff] }
 0x11f   : > { %2628 = vmatmul.msk.f32.gmra.mxu2 %vm387_vm2, %v3464_v26  ;;  %2796 = vpush %v2575_v32  ;;  %v1028_v32 = vadd.f32 %v3421_v41, %v3527_v46 }
 0x120   : > { %v1452_v10 = vpop.f32.mrf.mxu0 }
 0x122   : > { %v951_v4 = vpop.f32.mrf.mxu2  ;;  %2740 = vmatmul.msk.f32.gmra.mxu1 %vm387_vm2, %v3543_v52 }
 0x123   : > { %v3665_v1 = vadd.f32 %v3535_v50, %v951_v4  ;;  %2716 = vmatmul.msk.f32.vlgmr.msra.gmra.mxu0 %vm387_vm2, %v3358_v8  ;;  %v3686_v4 = vpop.f32.mrf.mxu1 }
 0x124   : > { %4030 = vst [vmem:[#allocation19_spill] sm:$0xff] %v3686_v4  ;;  %v2577_v4 = vld [vmem:[%s3014_s27 + $0xb] sm:$0x1]  ;;  %s734_s27 = sadd.s32 10, %s3004_s22  ;;  %s3793_s22 = sld [smem:[#allocation5 + %s772_s18]] }
 0x125   : > { %2706 = vmatmul.msk.f32.gmra.mxu3 %vm387_vm2, %v3407_v19  ;;  %2798 = vpush %v2577_v4  ;;  %s735_s30 = sld [smem:[#allocation4 + %s734_s27]] }
 0x126   : > { %2800 = vpush %v2579_v39  ;;  %v1034_v39 = vadd.f32 %v3460_v24, %v3557_v2  ;;  %v3746_v2 = vld [vmem:[#allocation2 + $0xe4] sm:$0xff]  ;;  %s736_s13 = sld [smem:[#allocation5 + %s734_s27]] }
 0x127   : > { %2629 = vmatmul.msk.f32.gmra.mxu2 %vm387_vm2, %v3477_v29 }
 0x128   : > { %v1455_v31 = vpop.f32.mrf.mxu0 }
 0x12a   : > { %v954_v50 = vpop.f32.mrf.mxu2  ;;  %2741 = vmatmul.msk.f32.gmra.mxu1 %vm387_vm2, %v3690_v36  ;;  %s791_s11 = smul.u32 24, %s3793_s22 }
 0x12b   : > { %v3682_v8 = vadd.f32 %v3553_v55, %v954_v50  ;;  %2717 = vmatmul.msk.f32.gmra.mxu0 %vm387_vm2, %v3381_v14  ;;  %v3697_v50 = vpop.f32.mrf.mxu3  ;;  %v3708_v46 = vpop.f32.mrf.mxu1  ;;  %s741_s25 = smul.u32 24, %s735_s30 }
 0x12c   : > { %s753_s2 = smul.u32 24, %s736_s13  ;;  %s792_s16 = scalar_lea.vmem %s3082_s15, %s791_s11 }
 0x12d   : > { %4029 = vst [vmem:[#allocation18_spill] sm:$0xff] %v3682_v8  ;;  %2707 = vmatmul.msk.f32.gmra.mxu3 %vm387_vm2, %v1381_v5  ;;  %v3710_v5 = vld [vmem:[#allocation2 + $0xcc] sm:$0xff]  ;;  %s742_s26 = scalar_lea.vmem %s3082_s15, %s741_s25 }
 0x12e   : > { %s754_s17 = scalar_lea.vmem %s3082_s15, %s753_s2 }
 0x12f   : > { %2682 = vmatmul.msk.f32.vlgmr.msra.gmra.mxu2 %vm387_vm2, %v3356_v7 }
 0x130   : > { %v1458_v19 = vpop.f32.mrf.mxu0 }
 0x132   : > { %v1158_v55 = vpop.f32.mrf.mxu2  ;;  %2742 = vmatmul.msk.f32.gmra.mxu1 %vm387_vm2, %v3710_v5 }
 0x133   : > { %v1206_v14 = vadd.f32 %v1158_v55, %v1028_v32  ;;  %2718 = vmatmul.msk.f32.gmra.mxu0 %vm387_vm2, %v3397_v18  ;;  %v1031_v32 = vadd.f32 %v3441_v47, %v3545_v53  ;;  %v3727_v53 = vld [vmem:[#allocation2 + $0xdc] sm:$0xff]  ;;  %v1037_v55 = vadd.f32 %v3483_v30, %v3574_v63 }
 0x135   : > { %v1353_v7 = vadd.f32 %v3572_v62, %v1206_v14  ;;  %2708 = vmatmul.msk.f32.gmra.mxu3 %vm387_vm2, %v3607_v22  ;;  %v3720_v62 = vpop.f32.mrf.mxu3 }
 0x137   : > { %2683 = vmatmul.msk.f32.gmra.mxu2 %vm387_vm2, %v3379_v13  ;;  %v3706_v41 = vadd.f32 %v1452_v10, %v1353_v7 }
 0x138   : > { %v1461_v8 = vpop.f32.mrf.mxu0 }
 0x13a   : > { %v1161_v13 = vpop.f32.mrf.mxu2  ;;  %2743 = vmatmul.msk.f32.gmra.mxu1 %vm387_vm2, %v3727_v53 }
 0x13b   : > { %v1207_v18 = vadd.f32 %v1161_v13, %v1031_v32  ;;  %2719 = vmatmul.msk.f32.gmra.mxu0 %vm387_vm2, %v3411_v21  ;;  %v3735_v21 = vpop.f32.mrf.mxu1  ;;  %v743_v13 = vld [vmem:[%s742_s26] sm:$0xff] }
 0x13d   : > { %v1354_v10 = vadd.f32 %v3591_v6, %v1207_v18  ;;  %2709 = vmatmul.msk.f32.gmra.mxu3 %vm387_vm2, %v3626_v0  ;;  %v744_v18 = vld [vmem:[%s742_s26 + $0x8] sm:$0xff] }
 0x13f   : > { %2684 = vmatmul.msk.f32.gmra.mxu2 %vm387_vm2, %v3395_v17  ;;  %v3725_v47 = vadd.f32 %v1455_v31, %v1354_v10  ;;  %v3740_v31 = vpop.f32.mrf.mxu3  ;;  %v745_v10 = vld [vmem:[%s742_s26 + $0x10] sm:$0xf] }
 0x140   : > { %v1464_v22 = vpop.f32.mrf.mxu0 }
 0x142   : > { %v1164_v6 = vpop.f32.mrf.mxu2  ;;  %2744 = vmatmul.msk.f32.gmra.mxu1 %vm387_vm2, %v3746_v2 }
 0x143   : > { %v1208_v4 = vadd.f32 %v1164_v6, %v1034_v39  ;;  %2720 = vmatmul.msk.f32.gmra.mxu0 %vm387_vm2, %v3429_v44  ;;  %v755_v6 = vld [vmem:[%s754_s17] sm:$0xff] }
 0x145   : > { %v1355_v17 = vadd.f32 %v3613_v23, %v1208_v4  ;;  %2710 = vmatmul.msk.f32.gmra.mxu3 %vm387_vm2, %v3643_v27  ;;  %v1040_v27 = vadd.f32 %v3503_v37, %v3589_v3  ;;  %v1043_v3 = vadd.f32 %v3519_v40, %v3605_v12  ;;  %v756_v4 = vld [vmem:[%s754_s17 + $0x8] sm:$0xff] }
 0x147   : > { %2685 = vmatmul.msk.f32.gmra.mxu2 %vm387_vm2, %v3409_v20  ;;  %v3744_v24 = vadd.f32 %v1458_v19, %v1355_v17  ;;  %v3757_v20 = vpop.f32.mrf.mxu1  ;;  %v3766_v14 = vpop.f32.mrf.mxu3  ;;  %v757_v17 = vld [vmem:[%s754_s17 + $0x10] sm:$0xf] }
 0x148   : > { %v1467_v0 = vpop.f32.mrf.mxu0 }
 0x14a   : > { %v1167_v44 = vpop.f32.mrf.mxu2 }
 0x14b   : > { %v1209_v23 = vadd.f32 %v1167_v44, %v1037_v55  ;;  %2721 = vmatmul.msk.f32.gmra.mxu0 %vm387_vm2, %v3445_v49 }
 0x14d   : > { %v1356_v19 = vadd.f32 %v3637_v54, %v1209_v23 }
 0x14f   : > { %2686 = vmatmul.msk.f32.gmra.mxu2 %vm387_vm2, %v3427_v43  ;;  %v3762_v30 = vadd.f32 %v1461_v8, %v1356_v19  ;;  %v3771_v43 = vpop.f32.mrf.mxu1  ;;  %s2795_s21 = spop %2794 }
 0x150   : > { %v1470_v63 = vpop.f32.mrf.mxu0  ;;  %s2797_s0 = spop %2796 }
 0x151   : > { %v760_v55 = vstv %s2797_s0 }
 0x152   : > { %v1170_v49 = vpop.f32.mrf.mxu2  ;;  %v763_v44 = vmul.f32 %v760_v55, %v756_v4  ;;  %v764_v23 = vmul.f32 %v760_v55, %v757_v17  ;;  %v794_v4 = vld [vmem:[%s792_s16 + $0x8] sm:$0xff]  ;;  %v795_v17 = vld [vmem:[%s792_s16 + $0x10] sm:$0xf] }
 0x153   : > { %v1210_v7 = vadd.f32 %v1170_v49, %v1040_v27  ;;  %2722 = vmatmul.msk.f32.gmra.mxu0 %vm387_vm2, %v3464_v26  ;;  %v3783_v26 = vpop.f32.mrf.mxu3  ;;  %v1046_v49 = vadd.f32 %v3541_v60, %v3624_v59  ;;  %v1049_v59 = vadd.f32 %v3563_v57, %v3641_v58  ;;  %v781_v57 = vld [vmem:[%s780_s19] sm:$0xff]  ;;  %v782_v58 = vld [vmem:[%s780_s19 + $0x8] sm:$0xff] }
 0x155   : > { %v1357_v54 = vadd.f32 %v3656_v11, %v1210_v7 }
 0x156   : > { %s2799_s1 = spop %2798 }
 0x157   : > { %2687 = vmatmul.msk.f32.gmra.mxu2 %vm387_vm2, %v3443_v48  ;;  %v3775_v8 = vadd.f32 %v1464_v22, %v1357_v54  ;;  %v748_v22 = vstv %s2795_s21  ;;  %v3797_v19 = vpop.f32.mrf.mxu1  ;;  %s2801_s14 = spop %2800 }
 0x158   : > { %v3777_v37 = vpop.f32.mrf.mxu0  ;;  %v750_v39 = vmul.f32 %v748_v22, %v743_v13  ;;  %v751_v40 = vmul.f32 %v748_v22, %v744_v18  ;;  %v752_v12 = vmul.f32 %v748_v22, %v745_v10  ;;  %v783_v10 = vld [vmem:[%s780_s19 + $0x10] sm:$0xf]  ;;  %v786_v22 = vstv %s2799_s1 }
 0x15a   : > { %v1173_v32 = vpop.f32.mrf.mxu2  ;;  %v766_v54 = vadd.f32 %v763_v44, %v751_v40  ;;  %v789_v40 = vmul.f32 %v786_v22, %v782_v58 }
 0x15b   : > { %v1211_v11 = vadd.f32 %v1173_v32, %v1043_v3  ;;  %2723 = vmatmul.msk.f32.gmra.mxu0 %vm387_vm2, %v3477_v29  ;;  %v762_v29 = vmul.f32 %v760_v55, %v755_v6  ;;  %v767_v3 = vadd.f32 %v764_v23, %v752_v12  ;;  %v790_v12 = vmul.f32 %v786_v22, %v783_v10  ;;  %v793_v6 = vld [vmem:[%s792_s16] sm:$0xff] }
 0x15c   : > { %770 = vst.msk [vmem:[#allocation2 + $0xf8] sm:$0xff] %vm387_vm2, %v766_v54 }
 0x15d   : > { %v1358_v48 = vadd.f32 %v3675_v16, %v1211_v11  ;;  %v765_v7 = vadd.f32 %v762_v29, %v750_v39  ;;  %771 = vst.msk [vmem:[#allocation2 + $0x100] sm:$0xf] %vm390_vm3, %v767_v3  ;;  %v788_v39 = vmul.f32 %v786_v22, %v781_v57 }
 0x15f   : > { %2688 = vmatmul.msk.f32.gmra.mxu2 %vm387_vm2, %v3462_v25  ;;  %v3795_v16 = vadd.f32 %v1467_v0, %v1358_v48  ;;  %769 = vst.msk [vmem:[#allocation2 + $0xf0] sm:$0xff] %vm387_vm2, %v765_v7  ;;  %v3807_v0 = vpop.f32.mrf.mxu3  ;;  %v3819_v48 = vpop.f32.mrf.mxu1 }
 0x160   : > { %v3799_v27 = vpop.f32.mrf.mxu0 }
 0x162   : > { %v1176_v25 = vpop.f32.mrf.mxu2 }
 0x163   : > { %v1212_v32 = vadd.f32 %v1176_v25, %v1046_v49  ;;  %2724 = vmatmul.msk.f32.gmra.mxu0 %vm387_vm2, %v3489_v34  ;;  %v1823_v7 = vld [vmem:[#allocation2 + $0xf8] sm:$0xff] }
 0x165   : > { %v1359_v11 = vadd.f32 %v3697_v50, %v1212_v32  ;;  %v2117_v32 = vld [vmem:[#allocation2 + $0xfc] sm:$0xff] }
 0x166   : > { %v1822_v18 = vld [vmem:[#allocation2 + $0xf0] sm:$0xff] }
 0x167   : > { %2689 = vmatmul.msk.f32.gmra.mxu2 %vm387_vm2, %v3475_v28  ;;  %v3815_v60 = vadd.f32 %v1470_v63, %v1359_v11  ;;  %2711 = vmatmul.msk.f32.gmra.mxu3 %vm387_vm2, %v1822_v18  ;;  %v2116_v28 = vld [vmem:[#allocation2 + $0xf4] sm:$0xff]  ;;  %v3828_v55 = vpop.f32.mrf.mxu3 }
 0x168   : > { %v1479_v34 = vpop.f32.mrf.mxu0  ;;  %2745 = vmatmul.msk.f32.gmra.mxu1 %vm387_vm2, %v2116_v28  ;;  %v1969_v58 = vld [vmem:[#allocation2 + $0xf2] sm:$0xff] }
 0x16a   : > { %v1179_v13 = vpop.f32.mrf.mxu2 }
 0x16b   : > { %v1213_v50 = vadd.f32 %v1179_v13, %v1049_v59  ;;  %2725 = vmatmul.msk.f32.gmra.mxu0 %vm387_vm2, %v3505_v38  ;;  %v798_v38 = vstv %s2801_s14 }
 0x16c   : > { %v800_v29 = vmul.f32 %v798_v38, %v793_v6  ;;  %v801_v44 = vmul.f32 %v798_v38, %v794_v4  ;;  %v802_v23 = vmul.f32 %v798_v38, %v795_v17  ;;  %v1970_v6 = vld [vmem:[#allocation2 + $0xfa] sm:$0xff] }
 0x16d   : > { %v1360_v63 = vadd.f32 %v3720_v62, %v1213_v50 }
 0x16e   : > { %v803_v54 = vadd.f32 %v800_v29, %v788_v39  ;;  %v804_v3 = vadd.f32 %v801_v44, %v789_v40  ;;  %v805_v25 = vadd.f32 %v802_v23, %v790_v12  ;;  %v4031_v23 = vld [vmem:[#allocation14_spill] sm:$0xff] }
 0x16f   : > { %2690 = vmatmul.msk.f32.gmra.mxu2 %vm387_vm2, %v3493_v35  ;;  %v3833_v62 = vadd.f32 %v3777_v37, %v1360_v63  ;;  %2712 = vmatmul.msk.f32.gmra.mxu3 %vm387_vm2, %v1823_v7  ;;  %v3840_v35 = vpop.f32.mrf.mxu1  ;;  %v1344_v13 = vpop.f32.mrf.mxu3 }
 0x170   : > { %v1482_v49 = vpop.f32.mrf.mxu0  ;;  %807 = vst.msk [vmem:[#allocation2 + $0x108] sm:$0xff] %vm387_vm2, %v803_v54  ;;  %2746 = vmatmul.msk.f32.gmra.mxu1 %vm387_vm2, %v2117_v32 }
 0x171   : > { %808 = vst.msk [vmem:[#allocation2 + $0x110] sm:$0xff] %vm387_vm2, %v804_v3 }
 0x172   : > { %v1182_v11 = vpop.f32.mrf.mxu2  ;;  %809 = vst.msk [vmem:[#allocation2 + $0x118] sm:$0xf] %vm390_vm3, %v805_v25  ;;  %v4032_v25 = vld [vmem:[#allocation16_spill] sm:$0xff] }
 0x173   : > { %v1214_v59 = vadd.f32 %v1182_v11, %v3566_v61  ;;  %2726 = vmatmul.msk.f32.gmra.mxu0 %vm387_vm2, %v3521_v42 }
 0x175   : > { %v1361_v37 = vadd.f32 %v3740_v31, %v1214_v59 }
 0x177   : > { %2691 = vmatmul.msk.f32.gmra.mxu2 %vm387_vm2, %v3509_v33  ;;  %v3849_v61 = vadd.f32 %v3799_v27, %v1361_v37  ;;  %v1824_v50 = vld [vmem:[#allocation2 + $0x108] sm:$0xff]  ;;  %v3857_v33 = vpop.f32.mrf.mxu1 }
 0x178   : > { %v1485_v42 = vpop.f32.mrf.mxu0  ;;  %2713 = vmatmul.msk.f32.gmra.mxu3 %vm387_vm2, %v1824_v50  ;;  %v2118_v31 = vld [vmem:[#allocation2 + $0x10c] sm:$0xff] }
 0x179   : > { %2747 = vmatmul.msk.f32.gmra.mxu1 %vm387_vm2, %v2118_v31  ;;  %v2119_v10 = vld [vmem:[#allocation2 + $0x114] sm:$0xff]  ;;  %v1971_v38 = vld [vmem:[#allocation2 + $0x10a] sm:$0xff] }
 0x17a   : > { %v1185_v18 = vpop.f32.mrf.mxu2  ;;  %v1972_v3 = vld [vmem:[#allocation2 + $0x112] sm:$0xff] }
 0x17b   : > { %v1215_v28 = vadd.f32 %v1185_v18, %v3581_v45  ;;  %2727 = vmatmul.msk.f32.gmra.mxu0 %vm387_vm2, %v3537_v51  ;;  %v1825_v45 = vld [vmem:[#allocation2 + $0x110] sm:$0xff]  ;;  %v1347_v51 = vpop.f32.mrf.mxu3 }
 0x17d   : > { %v1362_v63 = vadd.f32 %v3766_v14, %v1215_v28 }
 0x17f   : > { %2692 = vmatmul.msk.f32.gmra.mxu2 %vm387_vm2, %v3525_v56  ;;  %v3861_v27 = vadd.f32 %v1479_v34, %v1362_v63  ;;  %v3872_v34 = vpop.f32.mrf.mxu1 }
 0x180   : > { %v1488_v57 = vpop.f32.mrf.mxu0  ;;  %2714 = vmatmul.msk.f32.gmra.mxu3 %vm387_vm2, %v1825_v45 }
 0x181   : > { %2748 = vmatmul.msk.f32.gmra.mxu1 %vm387_vm2, %v2119_v10 }
 0x182   : > { %v1188_v22 = vpop.f32.mrf.mxu2 }
 0x183   : > { %v1216_v39 = vadd.f32 %v1188_v22, %v3598_v9  ;;  %2728 = vmatmul.msk.f32.gmra.mxu0 %vm387_vm2, %v1969_v58  ;;  %v1350_v4 = vpop.f32.mrf.mxu3  ;;  %v4033_v58 = vld [vmem:[#allocation18_spill] sm:$0xff] }
 0x185   : > { %v1363_v14 = vadd.f32 %v3783_v26, %v1216_v39 }
 0x187   : > { %2693 = vmatmul.msk.f32.gmra.mxu2 %vm387_vm2, %v3543_v52  ;;  %v3870_v56 = vadd.f32 %v1482_v49, %v1363_v14  ;;  %v3881_v29 = vpop.f32.mrf.mxu1 }
 0x188   : > { %v1491_v40 = vpop.f32.mrf.mxu0 }
 0x18a   : > { %v1191_v12 = vpop.f32.mrf.mxu2 }
 0x18b   : > { %v1217_v9 = vadd.f32 %v1191_v12, %v3616_v15  ;;  %2729 = vmatmul.msk.f32.gmra.mxu0 %vm387_vm2, %v1970_v6  ;;  %v1893_v7 = vpop.f32.mrf.mxu3 }
 0x18d   : > { %v1364_v17 = vadd.f32 %v3807_v0, %v1217_v9  ;;  %v3909_v9 = vld [vmem:[%s4002_s8] ss:$0 sm:$0xff] }
 0x18f   : > { %2694 = vmatmul.msk.f32.gmra.mxu2 %vm387_vm2, %v3690_v36  ;;  %v3879_v26 = vadd.f32 %v1485_v42, %v1364_v17  ;;  %v2187_v11 = vpop.f32.mrf.mxu1 }
 0x190   : > { %v1494_v52 = vpop.f32.mrf.mxu0 }
 0x192   : > { %v1194_v44 = vpop.f32.mrf.mxu2 }
 0x193   : > { %v1218_v49 = vadd.f32 %v1194_v44, %v4031_v23  ;;  %2730 = vmatmul.msk.f32.gmra.mxu0 %vm387_vm2, %v1971_v38  ;;  %v1896_v42 = vpop.f32.mrf.mxu3 }
 0x195   : > { %v1365_v15 = vadd.f32 %v3828_v55, %v1218_v49 }
 0x197   : > { %2695 = vmatmul.msk.f32.gmra.mxu2 %vm387_vm2, %v3710_v5  ;;  %v3888_v0 = vadd.f32 %v1488_v57, %v1365_v15  ;;  %v2190_v28 = vpop.f32.mrf.mxu1 }
 0x198   : > { %v1497_v36 = vpop.f32.mrf.mxu0 }
 0x19a   : > { %v1197_v54 = vpop.f32.mrf.mxu2 }
 0x19b   : > { %v1219_v32 = vadd.f32 %v1197_v54, %v4032_v25  ;;  %2731 = vmatmul.msk.f32.gmra.mxu0 %vm387_vm2, %v1972_v3  ;;  %v4037_v25 = vld [vmem:[#allocation13_spill] sm:$0xff] }
 0x19d   : > { %v1366_v59 = vadd.f32 %v1344_v13, %v1219_v32  ;;  %v1899_v13 = vpop.f32.mrf.mxu3  ;;  %v1649_v32 = vadd.f32 %v4037_v25, %v3744_v24 }
 0x19f   : > { %2696 = vmatmul.msk.f32.gmra.mxu2 %vm387_vm2, %v3727_v53  ;;  %v3894_v37 = vadd.f32 %v1491_v40, %v1366_v59  ;;  %v2193_v22 = vpop.f32.mrf.mxu1 }
 0x1a0   : > { %v2040_v55 = vpop.f32.mrf.mxu0 }
 0x1a2   : > { %v1200_v18 = vpop.f32.mrf.mxu2 }
 0x1a3   : > { %v1220_v5 = vadd.f32 %v1200_v18, %v3665_v1  ;;  %v4034_v1 = vld [vmem:[#allocation11_spill] sm:$0xff] }
 0x1a5   : > { %v1367_v50 = vadd.f32 %v1347_v51, %v1220_v5  ;;  %v1647_v51 = vadd.f32 %v4034_v1, %v3706_v41  ;;  %v1902_v12 = vpop.f32.mrf.mxu3 }
 0x1a7   : > { %2697 = vmatmul.msk.f32.gmra.mxu2 %vm387_vm2, %v3746_v2  ;;  %v3899_v31 = vadd.f32 %v1494_v52, %v1367_v50  ;;  %v4035_v52 = vld [vmem:[#allocation12_spill] sm:$0xff]  ;;  %v2196_v44 = vpop.f32.mrf.mxu1 }
 0x1a8   : > { %v2043_v63 = vpop.f32.mrf.mxu0  ;;  %v1648_v38 = vadd.f32 %v4035_v52, %v3725_v47 }
 0x1aa   : > { %v1203_v57 = vpop.f32.mrf.mxu2 }
 0x1ab   : > { %v1221_v45 = vadd.f32 %v1203_v57, %v4033_v58 }
 0x1ad   : > { %v1368_v53 = vadd.f32 %v1350_v4, %v1221_v45  ;;  %v4038_v45 = vld [vmem:[#allocation15_spill] sm:$0xff] }
 0x1af   : > { %v3902_v10 = vadd.f32 %v1497_v36, %v1368_v53  ;;  %v1905_v36 = vpop.f32.mrf.mxu3  ;;  %v2199_v18 = vpop.f32.mrf.mxu1 }
 0x1b0   : > { %v2046_v39 = vpop.f32.mrf.mxu0 }
 0x1b2   : > { %v1746_v14 = vpop.f32.mrf.mxu2 }
 0x1b3   : > { %v1794_v40 = vadd.f32 %v1746_v14, %v1647_v51 }
 0x1b5   : > { %v1941_v2 = vadd.f32 %v1893_v7, %v1794_v40 }
 0x1b7   : > { %v2088_v6 = vadd.f32 %v2040_v55, %v1941_v2  ;;  %v1908_v58 = vpop.f32.mrf.mxu3  ;;  %v2202_v40 = vpop.f32.mrf.mxu1 }
 0x1b8   : > { %v2049_v17 = vpop.f32.mrf.mxu0 }
 0x1b9   : > { %v2235_v4 = vadd.f32 %v2187_v11, %v2088_v6 }
 0x1ba   : > { %v1749_v23 = vpop.f32.mrf.mxu2 }
 0x1bb   : > { %v2255_v49 = vadd.f32 %v3909_v9, %v2235_v4  ;;  %v1795_v41 = vadd.f32 %v1749_v23, %v1648_v38 }
 0x1bd   : > { %v2271_v15 = vmax.f32 %v2255_v49, 0.0  ;;  %v1942_v7 = vadd.f32 %v1896_v42, %v1795_v41 }
 0x1bf   : > { %2287 = vst [vmem:[%s3919_s6] sm:$0xff] %v2271_v15  ;;  %v2089_v54 = vadd.f32 %v2043_v63, %v1942_v7  ;;  %v1650_v63 = vadd.f32 %v4038_v45, %v3762_v30  ;;  %v2205_v15 = vpop.f32.mrf.mxu1  ;;  %v4040_v7 = vld [vmem:[#allocation19_spill] sm:$0xff] }
 0x1c0   : > { %v2052_v3 = vpop.f32.mrf.mxu0 }
 0x1c1   : > { %v2236_v47 = vadd.f32 %v2190_v28, %v2089_v54 }
 0x1c2   : > { %v1752_v11 = vpop.f32.mrf.mxu2 }
 0x1c3   : > { %v2256_v59 = vadd.f32 %v3909_v9, %v2236_v47  ;;  %v1796_v55 = vadd.f32 %v1752_v11, %v1649_v32 }
 0x1c5   : > { %v2272_v5 = vmax.f32 %v2256_v59, 0.0  ;;  %v1943_v50 = vadd.f32 %v1899_v13, %v1796_v55  ;;  %v4039_v13 = vld [vmem:[#allocation17_spill] sm:$0xff] }
 0x1c7   : > { %2288 = vst [vmem:[%s3919_s6 + $0x8] sm:$0xff] %v2272_v5  ;;  %v2090_v57 = vadd.f32 %v2046_v39, %v1943_v50  ;;  %v1651_v39 = vadd.f32 %v4039_v13, %v3775_v8 }
 0x1c8   : > { %v2055_v28 = vpop.f32.mrf.mxu0 }
 0x1c9   : > { %v2237_v42 = vadd.f32 %v2193_v22, %v2090_v57  ;;  %v1911_v22 = vpop.f32.mrf.mxu3 }
 0x1ca   : > { %v1755_v53 = vpop.f32.mrf.mxu2 }
 0x1cb   : > { %v2257_v1 = vadd.f32 %v3909_v9, %v2237_v42  ;;  %v1797_v24 = vadd.f32 %v1755_v53, %v1650_v63  ;;  %v1654_v53 = vadd.f32 %v3735_v21, %v3833_v62 }
 0x1cd   : > { %v2273_v51 = vmax.f32 %v2257_v1, 0.0  ;;  %v1944_v14 = vadd.f32 %v1902_v12, %v1797_v24 }
 0x1cf   : > { %2289 = vst [vmem:[%s3919_s6 + $0x10] sm:$0xff] %v2273_v51  ;;  %v2091_v2 = vadd.f32 %v2049_v17, %v1944_v14  ;;  %v1652_v17 = vadd.f32 %v4040_v7, %v3795_v16 }
 0x1d0   : > { %v2058_v38 = vpop.f32.mrf.mxu0 }
 0x1d1   : > { %v2238_v6 = vadd.f32 %v2196_v44, %v2091_v2  ;;  %v1914_v47 = vpop.f32.mrf.mxu3 }
 0x1d2   : > { %v1758_v4 = vpop.f32.mrf.mxu2 }
 0x1d3   : > { %v2258_v52 = vadd.f32 %v3909_v9, %v2238_v6  ;;  %v1798_v30 = vadd.f32 %v1758_v4, %v1651_v39  ;;  %v1655_v6 = vadd.f32 %v3757_v20, %v3849_v61 }
 0x1d5   : > { %v2274_v23 = vmax.f32 %v2258_v52, 0.0  ;;  %v1945_v49 = vadd.f32 %v1905_v36, %v1798_v30  ;;  %v1653_v36 = vadd.f32 %v3708_v46, %v3815_v60 }
 0x1d7   : > { %2290 = vst [vmem:[%s3919_s6 + $0x18] sm:$0xff] %v2274_v23  ;;  %v2092_v41 = vadd.f32 %v2052_v3, %v1945_v49  ;;  %v2208_v3 = vpop.f32.mrf.mxu1  ;;  %v1656_v23 = vadd.f32 %v3771_v43, %v3861_v27 }
 0x1d8   : > { %v2061_v11 = vpop.f32.mrf.mxu0 }
 0x1d9   : > { %v2239_v12 = vadd.f32 %v2199_v18, %v2092_v41  ;;  %v1917_v42 = vpop.f32.mrf.mxu3 }
 0x1da   : > { %v1761_v44 = vpop.f32.mrf.mxu2 }
 0x1db   : > { %v2259_v54 = vadd.f32 %v3909_v9, %v2239_v12  ;;  %v1799_v8 = vadd.f32 %v1761_v44, %v1652_v17 }
 0x1dd   : > { %v2275_v25 = vmax.f32 %v2259_v54, 0.0  ;;  %v1946_v32 = vadd.f32 %v1908_v58, %v1799_v8  ;;  %v1657_v8 = vadd.f32 %v3797_v19, %v3870_v56 }
 0x1df   : > { %2291 = vst [vmem:[%s3919_s6 + $0x20] sm:$0xff] %v2275_v25  ;;  %v2093_v59 = vadd.f32 %v2055_v28, %v1946_v32  ;;  %v2211_v60 = vpop.f32.mrf.mxu1 }
 0x1e0   : > { %v2064_v63 = vpop.f32.mrf.mxu0 }
 0x1e1   : > { %v2240_v55 = vadd.f32 %v2202_v40, %v2093_v59  ;;  %v1920_v40 = vpop.f32.mrf.mxu3 }
 0x1e2   : > { %v1764_v18 = vpop.f32.mrf.mxu2 }
 0x1e3   : > { %v2260_v5 = vadd.f32 %v3909_v9, %v2240_v55  ;;  %v1800_v16 = vadd.f32 %v1764_v18, %v1653_v36 }
 0x1e5   : > { %v2276_v50 = vmax.f32 %v2260_v5, 0.0  ;;  %v1947_v57 = vadd.f32 %v1911_v22, %v1800_v16 }
 0x1e7   : > { %2292 = vst [vmem:[%s3919_s6 + $0x28] sm:$0xff] %v2276_v50  ;;  %v2094_v45 = vadd.f32 %v2058_v38, %v1947_v57  ;;  %v2214_v52 = vpop.f32.mrf.mxu1 }
 0x1e8   : > { %v2067_v39 = vpop.f32.mrf.mxu0 }
 0x1e9   : > { %v2241_v58 = vadd.f32 %v2205_v15, %v2094_v45  ;;  %v1923_v20 = vpop.f32.mrf.mxu3 }
 0x1ea   : > { %v1767_v28 = vpop.f32.mrf.mxu2 }
 0x1eb   : > { %v2261_v1 = vadd.f32 %v3909_v9, %v2241_v58  ;;  %v1801_v46 = vadd.f32 %v1767_v28, %v1654_v53  ;;  %v1659_v58 = vadd.f32 %v3840_v35, %v3888_v0 }
 0x1ed   : > { %v2277_v24 = vmax.f32 %v2261_v1, 0.0  ;;  %v1948_v51 = vadd.f32 %v1914_v47, %v1801_v46 }
 0x1ef   : > { %2293 = vst [vmem:[%s3919_s6 + $0x30] sm:$0xff] %v2277_v24  ;;  %v2095_v14 = vadd.f32 %v2061_v11, %v1948_v51  ;;  %v2217_v44 = vpop.f32.mrf.mxu1 }
 0x1f0   : > { %v2070_v61 = vpop.f32.mrf.mxu0 }
 0x1f1   : > { %v2242_v2 = vadd.f32 %v2208_v3, %v2095_v14  ;;  %v1926_v11 = vpop.f32.mrf.mxu3  ;;  %v1658_v3 = vadd.f32 %v3819_v48, %v3879_v26  ;;  %v1660_v14 = vadd.f32 %v3857_v33, %v3894_v37 }
 0x1f2   : > { %v1770_v13 = vpop.f32.mrf.mxu2 }
 0x1f3   : > { %v2262_v4 = vadd.f32 %v3909_v9, %v2242_v2  ;;  %v1802_v21 = vadd.f32 %v1770_v13, %v1655_v6 }
 0x1f5   : > { %v2278_v62 = vmax.f32 %v2262_v4, 0.0  ;;  %v1949_v22 = vadd.f32 %v1917_v42, %v1802_v21 }
 0x1f7   : > { %2294 = vst [vmem:[%s3919_s6 + $0x38] sm:$0xff] %v2278_v62  ;;  %v2096_v30 = vadd.f32 %v2064_v63, %v1949_v22  ;;  %v2220_v18 = vpop.f32.mrf.mxu1  ;;  %v1661_v62 = vadd.f32 %v3872_v34, %v3899_v31 }
 0x1f8   : > { %v2073_v59 = vpop.f32.mrf.mxu0 }
 0x1f9   : > { %v2243_v38 = vadd.f32 %v2211_v60, %v2096_v30  ;;  %v1929_v57 = vpop.f32.mrf.mxu3 }
 0x1fa   : > { %v1773_v49 = vpop.f32.mrf.mxu2 }
 0x1fb   : > { %v2263_v41 = vadd.f32 %v3909_v9, %v2243_v38  ;;  %v1803_v15 = vadd.f32 %v1773_v49, %v1656_v23 }
 0x1fd   : > { %v2279_v12 = vmax.f32 %v2263_v41, 0.0  ;;  %v1950_v7 = vadd.f32 %v1920_v40, %v1803_v15 }
 0x1ff   : > { %2295 = vst [vmem:[%s3919_s6 + $0x40] sm:$0xff] %v2279_v12  ;;  %v2097_v17 = vadd.f32 %v2067_v39, %v1950_v7  ;;  %v2223_v53 = vpop.f32.mrf.mxu1 }
 0x200   : > { %v2076_v45 = vpop.f32.mrf.mxu0 }
 0x201   : > { %v2244_v54 = vadd.f32 %v2214_v52, %v2097_v17  ;;  %v1932_v24 = vpop.f32.mrf.mxu3 }
 0x202   : > { %v1776_v47 = vpop.f32.mrf.mxu2 }
 0x203   : > { %v2264_v25 = vadd.f32 %v3909_v9, %v2244_v54  ;;  %v1804_v43 = vadd.f32 %v1776_v47, %v1657_v8 }
 0x205   : > { %v2280_v27 = vmax.f32 %v2264_v25, 0.0  ;;  %v1951_v32 = vadd.f32 %v1923_v20, %v1804_v43  ;;  %v1662_v20 = vadd.f32 %v3881_v29, %v3902_v10 }
 0x207   : > { %2296 = vst [vmem:[%s3919_s6 + $0x48] sm:$0xff] %v2280_v27  ;;  %v2098_v55 = vadd.f32 %v2070_v61, %v1951_v32  ;;  %v2226_v0 = vpop.f32.mrf.mxu1 }
 0x208   : > { %v2079_v40 = vpop.f32.mrf.mxu0 }
 0x209   : > { %v2245_v36 = vadd.f32 %v2217_v44, %v2098_v55  ;;  %v1935_v22 = vpop.f32.mrf.mxu3 }
 0x20a   : > { %v1779_v5 = vpop.f32.mrf.mxu2 }
 0x20b   : > { %v2265_v16 = vadd.f32 %v3909_v9, %v2245_v36  ;;  %v1805_v19 = vadd.f32 %v1779_v5, %v1658_v3 }
 0x20d   : > { %v2281_v56 = vmax.f32 %v2265_v16, 0.0  ;;  %v1952_v50 = vadd.f32 %v1926_v11, %v1805_v19 }
 0x20f   : > { %2297 = vst [vmem:[%s3919_s6 + $0x50] sm:$0xff] %v2281_v56  ;;  %v2099_v42 = vadd.f32 %v2073_v59, %v1952_v50  ;;  %v2229_v49 = vpop.f32.mrf.mxu1 }
 0x210   : > { %v2082_v37 = vpop.f32.mrf.mxu0 }
 0x211   : > { %v2246_v63 = vadd.f32 %v2220_v18, %v2099_v42  ;;  %v1938_v12 = vpop.f32.mrf.mxu3 }
 0x212   : > { %v1782_v28 = vpop.f32.mrf.mxu2 }
 0x213   : > { %v2266_v48 = vadd.f32 %v3909_v9, %v2246_v63  ;;  %v1806_v26 = vadd.f32 %v1782_v28, %v1659_v58 }
 0x215   : > { %v2282_v1 = vmax.f32 %v2266_v48, 0.0  ;;  %v1953_v46 = vadd.f32 %v1929_v57, %v1806_v26 }
 0x217   : > { %2298 = vst [vmem:[%s3919_s6 + $0x58] sm:$0xff] %v2282_v1  ;;  %v2100_v60 = vadd.f32 %v2076_v45, %v1953_v46  ;;  %v2232_v8 = vpop.f32.mrf.mxu1 }
 0x218   : > { %v2085_v44 = vpop.f32.mrf.mxu0 }
 0x219   : > { %v2247_v51 = vadd.f32 %v2223_v53, %v2100_v60 }
 0x21a   : > { %v1785_v2 = vpop.f32.mrf.mxu2 }
 0x21b   : > { %v2267_v6 = vadd.f32 %v3909_v9, %v2247_v51  ;;  %v1807_v35 = vadd.f32 %v1785_v2, %v1660_v14 }
 0x21d   : > { %v2283_v13 = vmax.f32 %v2267_v6, 0.0  ;;  %v1954_v39 = vadd.f32 %v1932_v24, %v1807_v35 }
 0x21f   : > { %2299 = vst [vmem:[%s3919_s6 + $0x60] sm:$0xff] %v2283_v13  ;;  %v2101_v4 = vadd.f32 %v2079_v40, %v1954_v39 }
 0x221   : > { %v2248_v21 = vadd.f32 %v2226_v0, %v2101_v4 }
 0x222   : > { %v1788_v52 = vpop.f32.mrf.mxu2 }
 0x223   : > { %v2268_v30 = vadd.f32 %v3909_v9, %v2248_v21  ;;  %v1808_v33 = vadd.f32 %v1788_v52, %v1661_v62 }
 0x225   : > { %v2284_v38 = vmax.f32 %v2268_v30, 0.0  ;;  %v1955_v23 = vadd.f32 %v1935_v22, %v1808_v33 }
 0x227   : > { %2300 = vst [vmem:[%s3919_s6 + $0x68] sm:$0xff] %v2284_v38  ;;  %v2102_v41 = vadd.f32 %v2082_v37, %v1955_v23 }
 0x229   : > { %v2249_v15 = vadd.f32 %v2229_v49, %v2102_v41 }
 0x22a   : > { %v1791_v61 = vpop.f32.mrf.mxu2 }
 0x22b   : > { %v2269_v34 = vadd.f32 %v3909_v9, %v2249_v15  ;;  %v1809_v31 = vadd.f32 %v1791_v61, %v1662_v20 }
 0x22d   : > { %v2285_v7 = vmax.f32 %v2269_v34, 0.0  ;;  %v1956_v17 = vadd.f32 %v1938_v12, %v1809_v31 }
 0x22f   : > { %2301 = vst [vmem:[%s3919_s6 + $0x70] sm:$0xff] %v2285_v7  ;;  %v2103_v54 = vadd.f32 %v2085_v44, %v1956_v17 }
 0x231   : > { %v2250_v47 = vadd.f32 %v2232_v8, %v2103_v54 }
 0x233   : > { %v2270_v25 = vadd.f32 %v3909_v9, %v2250_v47 }
 0x235   : > { %v2286_v43 = vmax.f32 %v2270_v25, 0.0 }
 0x237   : > { %2302 = vst [vmem:[%s3919_s6 + $0x78] sm:$0xff] %v2286_v43 }
 0x238 PF: > { %s32_s20 = sadd.s32 1, %s2909_s20   ;;  %s4041_s17 = sld [smem:[#allocation7_spill]] }
 0x239   : > { %p29_p7 = scmp.ge.s32.totalorder %s32_s20, 6   ;;  %s4042_s18 = sld [smem:[#allocation8_spill]] }
 0x23a   : > { %s4043_s19 = sld [smem:[#allocation9_spill]] }
 0x23b   : > { %s4044_s0 = sld [smem:[#allocation10_spill]]  ;;  %31 = sbr.rel (!%p29_p7) target bundleno = 14 (0xe), region = 148 }

</bundles_post_ra>
